<compile_context>
chip_gen: v5e
topology: v5e:2x2
jax: 0.10.0
libtpu: 0.0.40
codegen_flags: <defaults>
</compile_context>

<pallas_src>
import jax
import jax.numpy as jnp
from jax.experimental import pallas as pl
from jax.experimental.pallas import tpu as pltpu

_LANES = 128  # vreg lane width


def relu6_kernel(x_ref, o_ref):
    x = x_ref[...]
    zero = jnp.asarray(0.0, x.dtype)
    six = jnp.asarray(6.0, x.dtype)
    o_ref[...] = jnp.minimum(jnp.maximum(x, zero), six)


def _tensorcores_per_device():
    """TensorCores driven by one JAX TPU device (megacore-style chips -> 2)."""
    try:
        kind = (getattr(jax.devices()[0], "device_kind", "") or "").lower()
    except Exception:
        return 1
    # v4 / v5p / v7x put 2 TensorCores behind one device; v2/v3/v5e/v6e do not.
    if "v4" in kind or "v5p" in kind or "7" in kind:
        return 2
    return 1


def _vmem_block_budget_bytes():
    """Budget for ALL live block buffers (in + out, double-buffered)."""
    cap = None
    try:
        cap = getattr(pltpu.get_tpu_info(), "vmem_capacity_bytes", None)
    except Exception:
        cap = None
    if not cap:
        cap = 64 * 1024 * 1024  # conservative (v7x-sized) assumption
    # Stay well under the per-generation scoped-VMEM default (16 MiB on v5e).
    return max(cap // 8, 2 * 1024 * 1024)


def relu6_pallas(x, *, inplace=False):
    """Elementwise ReLU6 (clamp(x, 0, 6)) over an arbitrarily shaped array."""
    orig_shape = x.shape
    dtype = x.dtype
    n = x.size
    if n == 0:
        return x
    itemsize = jnp.dtype(dtype).itemsize

    flat = jnp.ravel(x)

    # Pad the (rare) ragged tail up to one lane width; zeros pass through
    # ReLU6 unchanged and are sliced off afterwards.
    # TODO(synk): handle the tail with a masked last block instead of a
    # pad + slice round trip (only matters when n % 128 != 0).
    pad = (-n) % _LANES
    if pad:
        flat = jnp.pad(flat, (0, pad))
    total = n + pad
    rows_total = total // _LANES

    cores = _tensorcores_per_device()
    budget = _vmem_block_budget_bytes()

    # Choose the number of contiguous row-slabs S such that:
    #  * S >= #TensorCores when that split is exact (one slab per core on v7x),
    #  * one slab (x4 for in+out double buffering) fits the VMEM budget,
    #  * S divides rows_total so every block is a full-extent (rows, 128) tile
    #    (contiguous HBM range, single DMA descriptor).
    def fits(s):
        return 4 * (rows_total // s) * _LANES * itemsize <= budget

    want = cores if (cores > 1 and rows_total % cores == 0) else 1
    num_slabs = None
    for s in range(want, rows_total + 1):
        if rows_total % s == 0 and fits(s):
            num_slabs = s
            break
    if num_slabs is None:
        num_slabs = rows_total  # (1, 128) blocks; always fits.

    rows = rows_total // num_slabs
    x3d = flat.reshape(num_slabs, rows, _LANES)

    block_spec = pl.BlockSpec((1, rows, _LANES), lambda i: (i, 0, 0))
    out_shape = jax.ShapeDtypeStruct((num_slabs, rows, _LANES), dtype)
    cost = pl.CostEstimate(flops=2 * n, transcendentals=0,
                           bytes_accessed=2 * n * itemsize)
    aliases = {0: 0} if inplace else {}

    def run(semantics):
        return pl.pallas_call(
            relu6_kernel,
            out_shape=out_shape,
            grid=(num_slabs,),
            in_specs=[block_spec],
            out_specs=block_spec,
            compiler_params=pltpu.CompilerParams(
                dimension_semantics=semantics),
            cost_estimate=cost,
            input_output_aliases=aliases,
        )(x3d)

    if cores > 1 and num_slabs == cores:
        # One contiguous slab per TensorCore (v7x-style megacore chips).
        try:
            out3d = run((pltpu.CORE_PARALLEL,))
        except Exception:
            # Lowering rejected core-parallel semantics: safe sequential grid.
            out3d = run(("arbitrary",))
    else:
        out3d = run(("arbitrary",))

    out_flat = out3d.reshape(-1)
    if pad:
        out_flat = out_flat[:n]
    return out_flat.reshape(orig_shape)


if __name__ == "__main__":
    key = jax.random.PRNGKey(0)
    # Module's forward implies NCHW (1, 144, 56, 56) (~1.7 MiB, f32).
    x18 = jax.random.normal(key, (1, 144, 56, 56), dtype=jnp.float32) * 4.0

    ref = jnp.clip(x18, 0.0, 6.0)
    jax.block_until_ready(ref)

    y = relu6_pallas(x18)
    jax.block_until_ready(y)
    assert y.shape == x18.shape and y.dtype == x18.dtype
    assert jnp.allclose(y, ref), "Mismatch vs reference ReLU6"

    # Also exercise the in-place-aliased path on a small tensor.
    x_small = jax.random.normal(jax.random.PRNGKey(1), (2, 4, 16, 16),
                                dtype=jnp.float32) * 4.0
    ref_small = jnp.clip(x_small, 0.0, 6.0)
    jax.block_until_ready(ref_small)
    y_small = relu6_pallas(x_small, inplace=True)
    jax.block_until_ready(y_small)
    assert jnp.allclose(y_small, ref_small), "Mismatch vs reference ReLU6 (small)"

    print("KERNEL_OK")
</pallas_src>

<mosaic_0001>
module attributes {stable_mosaic.version = 11 : i64} {
  func.func @relu6_kernel(%arg0: i32, %arg1: memref<1x3528x128xf32, #tpu.memory_space<vmem>>, %arg2: memref<1x3528x128xf32, #tpu.memory_space<vmem>>) attributes {dimension_semantics = [#tpu.dimension_semantics<arbitrary>], iteration_bounds = array<i64: 1>, scalar_prefetch = 0 : i64, scratch_operands = 0 : i64, tpu.core_type = #tpu.core_type<tc>, window_params = [{transform_indices = @transform_0, window_bounds = array<i64: 1, 3528, 128>}, {transform_indices = @transform_1, window_bounds = array<i64: 1, 3528, 128>}]} {
    %c0 = arith.constant 0 : index
    %c0_0 = arith.constant 0 : index
    %c0_1 = arith.constant 0 : index
    %0 = vector.load %arg1[%c0, %c0_0, %c0_1] : memref<1x3528x128xf32, #tpu.memory_space<vmem>>, vector<1x3528x128xf32>
    %cst = arith.constant 0.000000e+00 : f32
    %1 = vector.broadcast %cst : f32 to vector<1x3528x128xf32>
    %2 = arith.maximumf %0, %1 : vector<1x3528x128xf32>
    %cst_2 = arith.constant 6.000000e+00 : f32
    %3 = vector.broadcast %cst_2 : f32 to vector<1x3528x128xf32>
    %4 = arith.minimumf %2, %3 : vector<1x3528x128xf32>
    %c0_3 = arith.constant 0 : index
    %c0_4 = arith.constant 0 : index
    %c0_5 = arith.constant 0 : index
    %5 = vector.load %arg2[%c0_3, %c0_4, %c0_5] : memref<1x3528x128xf32, #tpu.memory_space<vmem>>, vector<1x3528x128xf32>
    tpu.vector_store %arg2[%c0_3, %c0_4, %c0_5], %4 {strides = array<i32>} : memref<1x3528x128xf32, #tpu.memory_space<vmem>>, vector<1x3528x128xf32>,
    return
  }
  func.func @transform_0(%arg0: i32) -> (i32, i32, i32) {
    %c0_i32 = arith.constant 0 : i32
    %c0_i32_0 = arith.constant 0 : i32
    %c0_i32_1 = arith.constant 0 : i32
    return %arg0, %c0_i32, %c0_i32_0 : i32, i32, i32
  }
  func.func @transform_1(%arg0: i32) -> (i32, i32, i32) {
    %c0_i32 = arith.constant 0 : i32
    %c0_i32_0 = arith.constant 0 : i32
    %c0_i32_1 = arith.constant 0 : i32
    return %arg0, %c0_i32, %c0_i32_0 : i32, i32, i32
  }
}

</mosaic_0001>

<bundles_post_ra>
// kernel: tpu_custom_call.1
= control target key start
LH: loop header
LB: loop body
LE: loop exit
PB: predicated region body
PF: predicated region fallthrough
CT: control target
= control target key end

     0   :  { %6 = vsyncpa [#allocation3], 0  ;;  %s1890_s0 = inlined_call_operand.hbm [shape: f32[1,3528,128], index: 0, kind: input, shape index: {}]   ;;  %s1891_s1 = inlined_call_operand.hbm [shape: f32[1,3528,128], index: 1, kind: output, shape index: {}]  }
   0x1   :  { %7 = vsyncpa [#allocation4], 0  ;;  %s12_s8 = sshll.u32 %s1890_s0, 4  ;;  %s1864_s9 = smov [#allocation2]   ;;  %s13_s8 = int_to_ptr.hbm [resolvable:$true] %s12_s8 }
   0x2   :  { %s14_s10 = sshll.u32 %s1864_s9, 4  ;;  %s1865_s11 = smov 128   ;;  %s15_s10 = int_to_ptr.vmem [resolvable:$true] %s14_s10 }
   0x3   :  { %s1866_s12 = smov 8  }
   0x4   :  { %20 = dma.hbm_to_vmem [thread:$0]  %s13_s8, 56448, %s15_s10, [#allocation3], %s1865_s11, %s1865_s11, %s1866_s12  }
   0x5   :  { %1860 = dma.done.wait [#allocation3], 56448  }
   0x6   :  { %1861 = vsyncadd [#allocation3], 4294910848  ;;  %v25_v0 = vld [vmem:[#allocation2] sm:$0xff]  ;;  %v26_v1 = vld [vmem:[#allocation2 + $0x8] sm:$0xff]  ;;  %s1867_s0 = smov [#allocation5]   ;;  %s1795_s16 = sshll.u32 %s1891_s1, 4  ;;  %s1796_s16 = int_to_ptr.hbm [resolvable:$true] %s1795_s16 }
   0x7   :  { %v27_v2 = vld [vmem:[#allocation2 + $0x10] sm:$0xff]  ;;  %v466_v3 = vmax.f32 %v25_v0, 0.0  ;;  %v467_v4 = vmax.f32 %v26_v1, 0.0  ;;  %v28_v6 = vld [vmem:[#allocation2 + $0x18] sm:$0xff]  ;;  %v29_v7 = vld [vmem:[#allocation2 + $0x20] sm:$0xff]  ;;  %s1793_s13 = sshll.u32 %s1867_s0, 4  ;;  %s1794_s13 = int_to_ptr.vmem [resolvable:$true] %s1793_s13 }
   0x8   :  { %v468_v5 = vmax.f32 %v27_v2, 0.0  ;;  %v30_v8 = vld [vmem:[#allocation2 + $0x28] sm:$0xff]  ;;  %v469_v9 = vmax.f32 %v28_v6, 0.0  ;;  %v470_v10 = vmax.f32 %v29_v7, 0.0  ;;  %v31_v12 = vld [vmem:[#allocation2 + $0x30] sm:$0xff]  ;;  %v32_v13 = vld [vmem:[#allocation2 + $0x38] sm:$0xff] }
   0x9   :  { %v471_v11 = vmax.f32 %v30_v8, 0.0  ;;  %v33_v14 = vld [vmem:[#allocation2 + $0x40] sm:$0xff]  ;;  %v907_v15 = vmin.f32 %v466_v3, 6.0  ;;  %v908_v16 = vmin.f32 %v467_v4, 6.0  ;;  %v472_v18 = vmax.f32 %v31_v12, 0.0  ;;  %v34_v19 = vld [vmem:[#allocation2 + $0x48] sm:$0xff] }
   0xa   :  { %v909_v17 = vmin.f32 %v468_v5, 6.0  ;;  %v910_v20 = vmin.f32 %v469_v9, 6.0  ;;  %v473_v21 = vmax.f32 %v32_v13, 0.0  ;;  %v35_v22 = vld [vmem:[#allocation2 + $0x50] sm:$0xff]  ;;  %v911_v23 = vmin.f32 %v470_v10, 6.0  ;;  %v36_v25 = vld [vmem:[#allocation2 + $0x58] sm:$0xff] }
   0xb   :  { %1348 = vst [vmem:[#allocation5] sm:$0xff] %v907_v15  ;;  %v474_v24 = vmax.f32 %v33_v14, 0.0  ;;  %v912_v26 = vmin.f32 %v471_v11, 6.0  ;;  %v475_v27 = vmax.f32 %v34_v19, 0.0  ;;  %v37_v28 = vld [vmem:[#allocation2 + $0x60] sm:$0xff]  ;;  %v913_v29 = vmin.f32 %v472_v18, 6.0 }
   0xc   :  { %1349 = vst [vmem:[#allocation5 + $0x8] sm:$0xff] %v908_v16  ;;  %v476_v30 = vmax.f32 %v35_v22, 0.0  ;;  %v38_v31 = vld [vmem:[#allocation2 + $0x68] sm:$0xff]  ;;  %v914_v32 = vmin.f32 %v473_v21, 6.0  ;;  %v477_v33 = vmax.f32 %v36_v25, 0.0  ;;  %v39_v34 = vld [vmem:[#allocation2 + $0x70] sm:$0xff] }
   0xd   :  { %1350 = vst [vmem:[#allocation5 + $0x10] sm:$0xff] %v909_v17  ;;  %v915_v35 = vmin.f32 %v474_v24, 6.0  ;;  %v478_v36 = vmax.f32 %v37_v28, 0.0  ;;  %v40_v37 = vld [vmem:[#allocation2 + $0x78] sm:$0xff]  ;;  %v916_v38 = vmin.f32 %v475_v27, 6.0  ;;  %v479_v39 = vmax.f32 %v38_v31, 0.0 }
   0xe   :  { %1351 = vst [vmem:[#allocation5 + $0x18] sm:$0xff] %v910_v20  ;;  %v41_v40 = vld [vmem:[#allocation2 + $0x80] sm:$0xff]  ;;  %v917_v41 = vmin.f32 %v476_v30, 6.0  ;;  %v480_v42 = vmax.f32 %v39_v34, 0.0  ;;  %v42_v43 = vld [vmem:[#allocation2 + $0x88] sm:$0xff]  ;;  %v918_v44 = vmin.f32 %v477_v33, 6.0 }
   0xf   :  { %1352 = vst [vmem:[#allocation5 + $0x20] sm:$0xff] %v911_v23  ;;  %v481_v45 = vmax.f32 %v40_v37, 0.0  ;;  %v43_v46 = vld [vmem:[#allocation2 + $0x90] sm:$0xff]  ;;  %v919_v47 = vmin.f32 %v478_v36, 6.0  ;;  %v482_v48 = vmax.f32 %v41_v40, 0.0  ;;  %v44_v49 = vld [vmem:[#allocation2 + $0x98] sm:$0xff] }
  0x10   :  { %1353 = vst [vmem:[#allocation5 + $0x28] sm:$0xff] %v912_v26  ;;  %v920_v50 = vmin.f32 %v479_v39, 6.0  ;;  %v483_v51 = vmax.f32 %v42_v43, 0.0  ;;  %v45_v52 = vld [vmem:[#allocation2 + $0xa0] sm:$0xff]  ;;  %v921_v53 = vmin.f32 %v480_v42, 6.0  ;;  %v484_v54 = vmax.f32 %v43_v46, 0.0 }
  0x11   :  { %1354 = vst [vmem:[#allocation5 + $0x30] sm:$0xff] %v913_v29  ;;  %v46_v55 = vld [vmem:[#allocation2 + $0xa8] sm:$0xff]  ;;  %v922_v56 = vmin.f32 %v481_v45, 6.0  ;;  %v485_v57 = vmax.f32 %v44_v49, 0.0  ;;  %v47_v58 = vld [vmem:[#allocation2 + $0xb0] sm:$0xff]  ;;  %v923_v59 = vmin.f32 %v482_v48, 6.0 }
  0x12   :  { %1355 = vst [vmem:[#allocation5 + $0x38] sm:$0xff] %v914_v32  ;;  %v486_v60 = vmax.f32 %v45_v52, 0.0  ;;  %v48_v61 = vld [vmem:[#allocation2 + $0xb8] sm:$0xff]  ;;  %v924_v62 = vmin.f32 %v483_v51, 6.0  ;;  %v487_v63 = vmax.f32 %v46_v55, 0.0  ;;  %v49_v0 = vld [vmem:[#allocation2 + $0xc0] sm:$0xff] }
  0x13   :  { %1356 = vst [vmem:[#allocation5 + $0x40] sm:$0xff] %v915_v35  ;;  %v925_v1 = vmin.f32 %v484_v54, 6.0  ;;  %v488_v2 = vmax.f32 %v47_v58, 0.0  ;;  %v50_v3 = vld [vmem:[#allocation2 + $0xc8] sm:$0xff]  ;;  %v926_v4 = vmin.f32 %v485_v57, 6.0  ;;  %v489_v5 = vmax.f32 %v48_v61, 0.0 }
  0x14   :  { %1357 = vst [vmem:[#allocation5 + $0x48] sm:$0xff] %v916_v38  ;;  %v51_v6 = vld [vmem:[#allocation2 + $0xd0] sm:$0xff]  ;;  %v927_v7 = vmin.f32 %v486_v60, 6.0  ;;  %v490_v8 = vmax.f32 %v49_v0, 0.0  ;;  %v52_v9 = vld [vmem:[#allocation2 + $0xd8] sm:$0xff]  ;;  %v928_v10 = vmin.f32 %v487_v63, 6.0 }
  0x15   :  { %1358 = vst [vmem:[#allocation5 + $0x50] sm:$0xff] %v917_v41  ;;  %v491_v11 = vmax.f32 %v50_v3, 0.0  ;;  %v53_v12 = vld [vmem:[#allocation2 + $0xe0] sm:$0xff]  ;;  %v929_v13 = vmin.f32 %v488_v2, 6.0  ;;  %v492_v14 = vmax.f32 %v51_v6, 0.0  ;;  %v54_v15 = vld [vmem:[#allocation2 + $0xe8] sm:$0xff] }
  0x16   :  { %1359 = vst [vmem:[#allocation5 + $0x58] sm:$0xff] %v918_v44  ;;  %v930_v16 = vmin.f32 %v489_v5, 6.0  ;;  %v493_v17 = vmax.f32 %v52_v9, 0.0  ;;  %v55_v18 = vld [vmem:[#allocation2 + $0xf0] sm:$0xff]  ;;  %v931_v19 = vmin.f32 %v490_v8, 6.0  ;;  %v494_v20 = vmax.f32 %v53_v12, 0.0 }
  0x17   :  { %1360 = vst [vmem:[#allocation5 + $0x60] sm:$0xff] %v919_v47  ;;  %v56_v21 = vld [vmem:[#allocation2 + $0xf8] sm:$0xff]  ;;  %v932_v22 = vmin.f32 %v491_v11, 6.0  ;;  %v495_v23 = vmax.f32 %v54_v15, 0.0  ;;  %v57_v24 = vld [vmem:[#allocation2 + $0x100] sm:$0xff]  ;;  %v933_v25 = vmin.f32 %v492_v14, 6.0 }
  0x18   :  { %1361 = vst [vmem:[#allocation5 + $0x68] sm:$0xff] %v920_v50  ;;  %v496_v26 = vmax.f32 %v55_v18, 0.0  ;;  %v58_v27 = vld [vmem:[#allocation2 + $0x108] sm:$0xff]  ;;  %v934_v28 = vmin.f32 %v493_v17, 6.0  ;;  %v497_v29 = vmax.f32 %v56_v21, 0.0  ;;  %v59_v30 = vld [vmem:[#allocation2 + $0x110] sm:$0xff] }
  0x19   :  { %1362 = vst [vmem:[#allocation5 + $0x70] sm:$0xff] %v921_v53  ;;  %v935_v31 = vmin.f32 %v494_v20, 6.0  ;;  %v498_v32 = vmax.f32 %v57_v24, 0.0  ;;  %v60_v33 = vld [vmem:[#allocation2 + $0x118] sm:$0xff]  ;;  %v936_v34 = vmin.f32 %v495_v23, 6.0  ;;  %v499_v35 = vmax.f32 %v58_v27, 0.0 }
  0x1a   :  { %1363 = vst [vmem:[#allocation5 + $0x78] sm:$0xff] %v922_v56  ;;  %v61_v36 = vld [vmem:[#allocation2 + $0x120] sm:$0xff]  ;;  %v937_v37 = vmin.f32 %v496_v26, 6.0  ;;  %v500_v38 = vmax.f32 %v59_v30, 0.0  ;;  %v62_v39 = vld [vmem:[#allocation2 + $0x128] sm:$0xff]  ;;  %v938_v40 = vmin.f32 %v497_v29, 6.0 }
  0x1b   :  { %1364 = vst [vmem:[#allocation5 + $0x80] sm:$0xff] %v923_v59  ;;  %v501_v41 = vmax.f32 %v60_v33, 0.0  ;;  %v63_v42 = vld [vmem:[#allocation2 + $0x130] sm:$0xff]  ;;  %v939_v43 = vmin.f32 %v498_v32, 6.0  ;;  %v502_v44 = vmax.f32 %v61_v36, 0.0  ;;  %v64_v45 = vld [vmem:[#allocation2 + $0x138] sm:$0xff] }
  0x1c   :  { %1365 = vst [vmem:[#allocation5 + $0x88] sm:$0xff] %v924_v62  ;;  %v940_v46 = vmin.f32 %v499_v35, 6.0  ;;  %v503_v47 = vmax.f32 %v62_v39, 0.0  ;;  %v65_v48 = vld [vmem:[#allocation2 + $0x140] sm:$0xff]  ;;  %v941_v49 = vmin.f32 %v500_v38, 6.0  ;;  %v504_v50 = vmax.f32 %v63_v42, 0.0 }
  0x1d   :  { %1366 = vst [vmem:[#allocation5 + $0x90] sm:$0xff] %v925_v1  ;;  %v66_v51 = vld [vmem:[#allocation2 + $0x148] sm:$0xff]  ;;  %v942_v52 = vmin.f32 %v501_v41, 6.0  ;;  %v505_v53 = vmax.f32 %v64_v45, 0.0  ;;  %v67_v54 = vld [vmem:[#allocation2 + $0x150] sm:$0xff]  ;;  %v943_v55 = vmin.f32 %v502_v44, 6.0 }
  0x1e   :  { %1367 = vst [vmem:[#allocation5 + $0x98] sm:$0xff] %v926_v4  ;;  %v506_v56 = vmax.f32 %v65_v48, 0.0  ;;  %v68_v57 = vld [vmem:[#allocation2 + $0x158] sm:$0xff]  ;;  %v944_v58 = vmin.f32 %v503_v47, 6.0  ;;  %v507_v59 = vmax.f32 %v66_v51, 0.0  ;;  %v69_v60 = vld [vmem:[#allocation2 + $0x160] sm:$0xff] }
  0x1f   :  { %1368 = vst [vmem:[#allocation5 + $0xa0] sm:$0xff] %v927_v7  ;;  %v945_v61 = vmin.f32 %v504_v50, 6.0  ;;  %v508_v62 = vmax.f32 %v67_v54, 0.0  ;;  %v70_v63 = vld [vmem:[#allocation2 + $0x168] sm:$0xff]  ;;  %v946_v0 = vmin.f32 %v505_v53, 6.0  ;;  %v509_v1 = vmax.f32 %v68_v57, 0.0 }
  0x20   :  { %1369 = vst [vmem:[#allocation5 + $0xa8] sm:$0xff] %v928_v10  ;;  %v71_v2 = vld [vmem:[#allocation2 + $0x170] sm:$0xff]  ;;  %v947_v3 = vmin.f32 %v506_v56, 6.0  ;;  %v510_v4 = vmax.f32 %v69_v60, 0.0  ;;  %v72_v5 = vld [vmem:[#allocation2 + $0x178] sm:$0xff]  ;;  %v948_v6 = vmin.f32 %v507_v59, 6.0 }
  0x21   :  { %1370 = vst [vmem:[#allocation5 + $0xb0] sm:$0xff] %v929_v13  ;;  %v511_v7 = vmax.f32 %v70_v63, 0.0  ;;  %v73_v8 = vld [vmem:[#allocation2 + $0x180] sm:$0xff]  ;;  %v949_v9 = vmin.f32 %v508_v62, 6.0  ;;  %v512_v10 = vmax.f32 %v71_v2, 0.0  ;;  %v74_v11 = vld [vmem:[#allocation2 + $0x188] sm:$0xff] }
  0x22   :  { %1371 = vst [vmem:[#allocation5 + $0xb8] sm:$0xff] %v930_v16  ;;  %v950_v12 = vmin.f32 %v509_v1, 6.0  ;;  %v513_v13 = vmax.f32 %v72_v5, 0.0  ;;  %v75_v14 = vld [vmem:[#allocation2 + $0x190] sm:$0xff]  ;;  %v951_v15 = vmin.f32 %v510_v4, 6.0  ;;  %v514_v16 = vmax.f32 %v73_v8, 0.0 }
  0x23   :  { %1372 = vst [vmem:[#allocation5 + $0xc0] sm:$0xff] %v931_v19  ;;  %v76_v17 = vld [vmem:[#allocation2 + $0x198] sm:$0xff]  ;;  %v952_v18 = vmin.f32 %v511_v7, 6.0  ;;  %v515_v19 = vmax.f32 %v74_v11, 0.0  ;;  %v77_v20 = vld [vmem:[#allocation2 + $0x1a0] sm:$0xff]  ;;  %v953_v21 = vmin.f32 %v512_v10, 6.0 }
  0x24   :  { %1373 = vst [vmem:[#allocation5 + $0xc8] sm:$0xff] %v932_v22  ;;  %v516_v22 = vmax.f32 %v75_v14, 0.0  ;;  %v78_v23 = vld [vmem:[#allocation2 + $0x1a8] sm:$0xff]  ;;  %v954_v24 = vmin.f32 %v513_v13, 6.0  ;;  %v79_v26 = vld [vmem:[#allocation2 + $0x1b0] sm:$0xff]  ;;  %v955_v27 = vmin.f32 %v514_v16, 6.0 }
  0x25   :  { %1374 = vst [vmem:[#allocation5 + $0xd0] sm:$0xff] %v933_v25  ;;  %v517_v25 = vmax.f32 %v76_v17, 0.0  ;;  %v80_v29 = vld [vmem:[#allocation2 + $0x1b8] sm:$0xff]  ;;  %v956_v30 = vmin.f32 %v515_v19, 6.0  ;;  %v81_v32 = vld [vmem:[#allocation2 + $0x1c0] sm:$0xff]  ;;  %v82_v35 = vld [vmem:[#allocation2 + $0x1c8] sm:$0xff] }
  0x26   :  { %1375 = vst [vmem:[#allocation5 + $0xd8] sm:$0xff] %v934_v28  ;;  %v518_v28 = vmax.f32 %v77_v20, 0.0  ;;  %v957_v33 = vmin.f32 %v516_v22, 6.0  ;;  %v83_v38 = vld [vmem:[#allocation2 + $0x1d0] sm:$0xff]  ;;  %v84_v41 = vld [vmem:[#allocation2 + $0x1d8] sm:$0xff]  ;;  %v85_v44 = vld [vmem:[#allocation2 + $0x1e0] sm:$0xff] }
  0x27   :  { %1376 = vst [vmem:[#allocation5 + $0xe0] sm:$0xff] %v935_v31  ;;  %v519_v31 = vmax.f32 %v78_v23, 0.0  ;;  %v958_v36 = vmin.f32 %v517_v25, 6.0  ;;  %v86_v47 = vld [vmem:[#allocation2 + $0x1e8] sm:$0xff]  ;;  %v87_v50 = vld [vmem:[#allocation2 + $0x1f0] sm:$0xff]  ;;  %v88_v53 = vld [vmem:[#allocation2 + $0x1f8] sm:$0xff] }
  0x28   :  { %1377 = vst [vmem:[#allocation5 + $0xe8] sm:$0xff] %v936_v34  ;;  %v520_v34 = vmax.f32 %v79_v26, 0.0  ;;  %v959_v39 = vmin.f32 %v518_v28, 6.0  ;;  %v89_v56 = vld [vmem:[#allocation2 + $0x200] sm:$0xff]  ;;  %v90_v59 = vld [vmem:[#allocation2 + $0x208] sm:$0xff]  ;;  %v91_v62 = vld [vmem:[#allocation2 + $0x210] sm:$0xff] }
  0x29   :  { %1378 = vst [vmem:[#allocation5 + $0xf0] sm:$0xff] %v937_v37  ;;  %v521_v37 = vmax.f32 %v80_v29, 0.0  ;;  %v960_v42 = vmin.f32 %v519_v31, 6.0  ;;  %v92_v1 = vld [vmem:[#allocation2 + $0x218] sm:$0xff]  ;;  %v93_v4 = vld [vmem:[#allocation2 + $0x220] sm:$0xff]  ;;  %v94_v7 = vld [vmem:[#allocation2 + $0x228] sm:$0xff] }
  0x2a   :  { %1379 = vst [vmem:[#allocation5 + $0xf8] sm:$0xff] %v938_v40  ;;  %v522_v40 = vmax.f32 %v81_v32, 0.0  ;;  %v961_v45 = vmin.f32 %v520_v34, 6.0  ;;  %v95_v10 = vld [vmem:[#allocation2 + $0x230] sm:$0xff]  ;;  %v96_v13 = vld [vmem:[#allocation2 + $0x238] sm:$0xff]  ;;  %v97_v16 = vld [vmem:[#allocation2 + $0x240] sm:$0xff] }
  0x2b   :  { %1380 = vst [vmem:[#allocation5 + $0x100] sm:$0xff] %v939_v43  ;;  %v523_v43 = vmax.f32 %v82_v35, 0.0  ;;  %v962_v48 = vmin.f32 %v521_v37, 6.0  ;;  %v98_v19 = vld [vmem:[#allocation2 + $0x248] sm:$0xff]  ;;  %v99_v22 = vld [vmem:[#allocation2 + $0x250] sm:$0xff]  ;;  %v100_v25 = vld [vmem:[#allocation2 + $0x258] sm:$0xff] }
  0x2c   :  { %1381 = vst [vmem:[#allocation5 + $0x108] sm:$0xff] %v940_v46  ;;  %v524_v46 = vmax.f32 %v83_v38, 0.0  ;;  %v963_v51 = vmin.f32 %v522_v40, 6.0  ;;  %v101_v28 = vld [vmem:[#allocation2 + $0x260] sm:$0xff]  ;;  %v102_v31 = vld [vmem:[#allocation2 + $0x268] sm:$0xff]  ;;  %v103_v34 = vld [vmem:[#allocation2 + $0x270] sm:$0xff] }
  0x2d   :  { %1382 = vst [vmem:[#allocation5 + $0x110] sm:$0xff] %v941_v49  ;;  %v525_v49 = vmax.f32 %v84_v41, 0.0  ;;  %v964_v54 = vmin.f32 %v523_v43, 6.0  ;;  %v104_v37 = vld [vmem:[#allocation2 + $0x278] sm:$0xff]  ;;  %v105_v40 = vld [vmem:[#allocation2 + $0x280] sm:$0xff]  ;;  %v106_v43 = vld [vmem:[#allocation2 + $0x288] sm:$0xff] }
  0x2e   :  { %1383 = vst [vmem:[#allocation5 + $0x118] sm:$0xff] %v942_v52  ;;  %v526_v52 = vmax.f32 %v85_v44, 0.0  ;;  %v965_v57 = vmin.f32 %v524_v46, 6.0  ;;  %v107_v46 = vld [vmem:[#allocation2 + $0x290] sm:$0xff] }
  0x2f   :  { %1384 = vst [vmem:[#allocation5 + $0x120] sm:$0xff] %v943_v55  ;;  %v527_v55 = vmax.f32 %v86_v47, 0.0  ;;  %v966_v60 = vmin.f32 %v525_v49, 6.0  ;;  %v108_v49 = vld [vmem:[#allocation2 + $0x298] sm:$0xff] }
  0x30   :  { %1385 = vst [vmem:[#allocation5 + $0x128] sm:$0xff] %v944_v58  ;;  %v528_v58 = vmax.f32 %v87_v50, 0.0  ;;  %v967_v63 = vmin.f32 %v526_v52, 6.0  ;;  %v109_v52 = vld [vmem:[#allocation2 + $0x2a0] sm:$0xff] }
  0x31   :  { %1386 = vst [vmem:[#allocation5 + $0x130] sm:$0xff] %v945_v61  ;;  %v529_v61 = vmax.f32 %v88_v53, 0.0  ;;  %v968_v2 = vmin.f32 %v527_v55, 6.0  ;;  %v110_v55 = vld [vmem:[#allocation2 + $0x2a8] sm:$0xff] }
  0x32   :  { %1387 = vst [vmem:[#allocation5 + $0x138] sm:$0xff] %v946_v0  ;;  %v530_v0 = vmax.f32 %v89_v56, 0.0  ;;  %v969_v5 = vmin.f32 %v528_v58, 6.0  ;;  %v111_v58 = vld [vmem:[#allocation2 + $0x2b0] sm:$0xff] }
  0x33   :  { %1388 = vst [vmem:[#allocation5 + $0x140] sm:$0xff] %v947_v3  ;;  %v531_v3 = vmax.f32 %v90_v59, 0.0  ;;  %v970_v8 = vmin.f32 %v529_v61, 6.0  ;;  %v112_v61 = vld [vmem:[#allocation2 + $0x2b8] sm:$0xff] }
  0x34   :  { %1389 = vst [vmem:[#allocation5 + $0x148] sm:$0xff] %v948_v6  ;;  %v532_v6 = vmax.f32 %v91_v62, 0.0  ;;  %v971_v11 = vmin.f32 %v530_v0, 6.0  ;;  %v113_v0 = vld [vmem:[#allocation2 + $0x2c0] sm:$0xff] }
  0x35   :  { %1390 = vst [vmem:[#allocation5 + $0x150] sm:$0xff] %v949_v9  ;;  %v533_v9 = vmax.f32 %v92_v1, 0.0  ;;  %v972_v14 = vmin.f32 %v531_v3, 6.0  ;;  %v114_v3 = vld [vmem:[#allocation2 + $0x2c8] sm:$0xff] }
  0x36   :  { %1391 = vst [vmem:[#allocation5 + $0x158] sm:$0xff] %v950_v12  ;;  %v534_v12 = vmax.f32 %v93_v4, 0.0  ;;  %v973_v17 = vmin.f32 %v532_v6, 6.0  ;;  %v115_v6 = vld [vmem:[#allocation2 + $0x2d0] sm:$0xff] }
  0x37   :  { %1392 = vst [vmem:[#allocation5 + $0x160] sm:$0xff] %v951_v15  ;;  %v535_v15 = vmax.f32 %v94_v7, 0.0  ;;  %v974_v20 = vmin.f32 %v533_v9, 6.0  ;;  %v116_v9 = vld [vmem:[#allocation2 + $0x2d8] sm:$0xff] }
  0x38   :  { %1393 = vst [vmem:[#allocation5 + $0x168] sm:$0xff] %v952_v18  ;;  %v536_v18 = vmax.f32 %v95_v10, 0.0  ;;  %v975_v23 = vmin.f32 %v534_v12, 6.0  ;;  %v117_v12 = vld [vmem:[#allocation2 + $0x2e0] sm:$0xff] }
  0x39   :  { %1394 = vst [vmem:[#allocation5 + $0x170] sm:$0xff] %v953_v21  ;;  %v537_v21 = vmax.f32 %v96_v13, 0.0  ;;  %v976_v26 = vmin.f32 %v535_v15, 6.0  ;;  %v118_v15 = vld [vmem:[#allocation2 + $0x2e8] sm:$0xff] }
  0x3a   :  { %1395 = vst [vmem:[#allocation5 + $0x178] sm:$0xff] %v954_v24  ;;  %v538_v24 = vmax.f32 %v97_v16, 0.0  ;;  %v977_v29 = vmin.f32 %v536_v18, 6.0  ;;  %v119_v18 = vld [vmem:[#allocation2 + $0x2f0] sm:$0xff] }
  0x3b   :  { %1396 = vst [vmem:[#allocation5 + $0x180] sm:$0xff] %v955_v27  ;;  %v539_v27 = vmax.f32 %v98_v19, 0.0  ;;  %v978_v32 = vmin.f32 %v537_v21, 6.0  ;;  %v120_v21 = vld [vmem:[#allocation2 + $0x2f8] sm:$0xff] }
  0x3c   :  { %1397 = vst [vmem:[#allocation5 + $0x188] sm:$0xff] %v956_v30  ;;  %v540_v30 = vmax.f32 %v99_v22, 0.0  ;;  %v979_v35 = vmin.f32 %v538_v24, 6.0  ;;  %v121_v24 = vld [vmem:[#allocation2 + $0x300] sm:$0xff] }
  0x3d   :  { %1398 = vst [vmem:[#allocation5 + $0x190] sm:$0xff] %v957_v33  ;;  %v541_v33 = vmax.f32 %v100_v25, 0.0  ;;  %v980_v38 = vmin.f32 %v539_v27, 6.0  ;;  %v122_v27 = vld [vmem:[#allocation2 + $0x308] sm:$0xff] }
  0x3e   :  { %1399 = vst [vmem:[#allocation5 + $0x198] sm:$0xff] %v958_v36  ;;  %v542_v36 = vmax.f32 %v101_v28, 0.0  ;;  %v981_v41 = vmin.f32 %v540_v30, 6.0  ;;  %v123_v30 = vld [vmem:[#allocation2 + $0x310] sm:$0xff] }
  0x3f   :  { %1400 = vst [vmem:[#allocation5 + $0x1a0] sm:$0xff] %v959_v39  ;;  %v543_v39 = vmax.f32 %v102_v31, 0.0  ;;  %v982_v44 = vmin.f32 %v541_v33, 6.0  ;;  %v124_v33 = vld [vmem:[#allocation2 + $0x318] sm:$0xff] }
  0x40   :  { %1401 = vst [vmem:[#allocation5 + $0x1a8] sm:$0xff] %v960_v42  ;;  %v544_v42 = vmax.f32 %v103_v34, 0.0  ;;  %v983_v47 = vmin.f32 %v542_v36, 6.0  ;;  %v125_v36 = vld [vmem:[#allocation2 + $0x320] sm:$0xff] }
  0x41   :  { %1402 = vst [vmem:[#allocation5 + $0x1b0] sm:$0xff] %v961_v45  ;;  %v545_v45 = vmax.f32 %v104_v37, 0.0  ;;  %v984_v50 = vmin.f32 %v543_v39, 6.0  ;;  %v126_v39 = vld [vmem:[#allocation2 + $0x328] sm:$0xff] }
  0x42   :  { %1403 = vst [vmem:[#allocation5 + $0x1b8] sm:$0xff] %v962_v48  ;;  %v546_v48 = vmax.f32 %v105_v40, 0.0  ;;  %v985_v53 = vmin.f32 %v544_v42, 6.0  ;;  %v127_v42 = vld [vmem:[#allocation2 + $0x330] sm:$0xff] }
  0x43   :  { %1404 = vst [vmem:[#allocation5 + $0x1c0] sm:$0xff] %v963_v51  ;;  %v547_v51 = vmax.f32 %v106_v43, 0.0  ;;  %v986_v56 = vmin.f32 %v545_v45, 6.0  ;;  %v128_v45 = vld [vmem:[#allocation2 + $0x338] sm:$0xff] }
  0x44   :  { %1405 = vst [vmem:[#allocation5 + $0x1c8] sm:$0xff] %v964_v54  ;;  %v548_v54 = vmax.f32 %v107_v46, 0.0  ;;  %v987_v59 = vmin.f32 %v546_v48, 6.0  ;;  %v129_v48 = vld [vmem:[#allocation2 + $0x340] sm:$0xff] }
  0x45   :  { %1406 = vst [vmem:[#allocation5 + $0x1d0] sm:$0xff] %v965_v57  ;;  %v549_v57 = vmax.f32 %v108_v49, 0.0  ;;  %v988_v62 = vmin.f32 %v547_v51, 6.0  ;;  %v130_v51 = vld [vmem:[#allocation2 + $0x348] sm:$0xff] }
  0x46   :  { %1407 = vst [vmem:[#allocation5 + $0x1d8] sm:$0xff] %v966_v60  ;;  %v550_v60 = vmax.f32 %v109_v52, 0.0  ;;  %v989_v1 = vmin.f32 %v548_v54, 6.0  ;;  %v131_v54 = vld [vmem:[#allocation2 + $0x350] sm:$0xff] }
  0x47   :  { %1408 = vst [vmem:[#allocation5 + $0x1e0] sm:$0xff] %v967_v63  ;;  %v551_v63 = vmax.f32 %v110_v55, 0.0  ;;  %v990_v4 = vmin.f32 %v549_v57, 6.0  ;;  %v132_v57 = vld [vmem:[#allocation2 + $0x358] sm:$0xff] }
  0x48   :  { %1409 = vst [vmem:[#allocation5 + $0x1e8] sm:$0xff] %v968_v2  ;;  %v552_v2 = vmax.f32 %v111_v58, 0.0  ;;  %v991_v7 = vmin.f32 %v550_v60, 6.0  ;;  %v133_v60 = vld [vmem:[#allocation2 + $0x360] sm:$0xff] }
  0x49   :  { %1410 = vst [vmem:[#allocation5 + $0x1f0] sm:$0xff] %v969_v5  ;;  %v553_v5 = vmax.f32 %v112_v61, 0.0  ;;  %v992_v10 = vmin.f32 %v551_v63, 6.0  ;;  %v134_v63 = vld [vmem:[#allocation2 + $0x368] sm:$0xff] }
  0x4a   :  { %1411 = vst [vmem:[#allocation5 + $0x1f8] sm:$0xff] %v970_v8  ;;  %v554_v8 = vmax.f32 %v113_v0, 0.0  ;;  %v993_v13 = vmin.f32 %v552_v2, 6.0  ;;  %v135_v2 = vld [vmem:[#allocation2 + $0x370] sm:$0xff] }
  0x4b   :  { %1412 = vst [vmem:[#allocation5 + $0x200] sm:$0xff] %v971_v11  ;;  %v555_v11 = vmax.f32 %v114_v3, 0.0  ;;  %v994_v16 = vmin.f32 %v553_v5, 6.0  ;;  %v136_v5 = vld [vmem:[#allocation2 + $0x378] sm:$0xff] }
  0x4c   :  { %1413 = vst [vmem:[#allocation5 + $0x208] sm:$0xff] %v972_v14  ;;  %v556_v14 = vmax.f32 %v115_v6, 0.0  ;;  %v995_v19 = vmin.f32 %v554_v8, 6.0  ;;  %v137_v8 = vld [vmem:[#allocation2 + $0x380] sm:$0xff] }
  0x4d   :  { %1414 = vst [vmem:[#allocation5 + $0x210] sm:$0xff] %v973_v17  ;;  %v557_v17 = vmax.f32 %v116_v9, 0.0  ;;  %v996_v22 = vmin.f32 %v555_v11, 6.0  ;;  %v138_v11 = vld [vmem:[#allocation2 + $0x388] sm:$0xff] }
  0x4e   :  { %1415 = vst [vmem:[#allocation5 + $0x218] sm:$0xff] %v974_v20  ;;  %v558_v20 = vmax.f32 %v117_v12, 0.0  ;;  %v997_v25 = vmin.f32 %v556_v14, 6.0  ;;  %v139_v14 = vld [vmem:[#allocation2 + $0x390] sm:$0xff] }
  0x4f   :  { %1416 = vst [vmem:[#allocation5 + $0x220] sm:$0xff] %v975_v23  ;;  %v559_v23 = vmax.f32 %v118_v15, 0.0  ;;  %v998_v28 = vmin.f32 %v557_v17, 6.0  ;;  %v140_v17 = vld [vmem:[#allocation2 + $0x398] sm:$0xff] }
  0x50   :  { %1417 = vst [vmem:[#allocation5 + $0x228] sm:$0xff] %v976_v26  ;;  %v560_v26 = vmax.f32 %v119_v18, 0.0  ;;  %v999_v31 = vmin.f32 %v558_v20, 6.0  ;;  %v141_v20 = vld [vmem:[#allocation2 + $0x3a0] sm:$0xff] }
  0x51   :  { %1418 = vst [vmem:[#allocation5 + $0x230] sm:$0xff] %v977_v29  ;;  %v561_v29 = vmax.f32 %v120_v21, 0.0  ;;  %v1000_v34 = vmin.f32 %v559_v23, 6.0  ;;  %v142_v23 = vld [vmem:[#allocation2 + $0x3a8] sm:$0xff] }
  0x52   :  { %1419 = vst [vmem:[#allocation5 + $0x238] sm:$0xff] %v978_v32  ;;  %v562_v32 = vmax.f32 %v121_v24, 0.0  ;;  %v1001_v37 = vmin.f32 %v560_v26, 6.0  ;;  %v143_v26 = vld [vmem:[#allocation2 + $0x3b0] sm:$0xff] }
  0x53   :  { %1420 = vst [vmem:[#allocation5 + $0x240] sm:$0xff] %v979_v35  ;;  %v563_v35 = vmax.f32 %v122_v27, 0.0  ;;  %v1002_v40 = vmin.f32 %v561_v29, 6.0  ;;  %v144_v29 = vld [vmem:[#allocation2 + $0x3b8] sm:$0xff] }
  0x54   :  { %1421 = vst [vmem:[#allocation5 + $0x248] sm:$0xff] %v980_v38  ;;  %v564_v38 = vmax.f32 %v123_v30, 0.0  ;;  %v1003_v43 = vmin.f32 %v562_v32, 6.0  ;;  %v145_v32 = vld [vmem:[#allocation2 + $0x3c0] sm:$0xff] }
  0x55   :  { %1422 = vst [vmem:[#allocation5 + $0x250] sm:$0xff] %v981_v41  ;;  %v565_v41 = vmax.f32 %v124_v33, 0.0  ;;  %v1004_v46 = vmin.f32 %v563_v35, 6.0  ;;  %v146_v35 = vld [vmem:[#allocation2 + $0x3c8] sm:$0xff] }
  0x56   :  { %1423 = vst [vmem:[#allocation5 + $0x258] sm:$0xff] %v982_v44  ;;  %v566_v44 = vmax.f32 %v125_v36, 0.0  ;;  %v1005_v49 = vmin.f32 %v564_v38, 6.0  ;;  %v147_v38 = vld [vmem:[#allocation2 + $0x3d0] sm:$0xff] }
  0x57   :  { %1424 = vst [vmem:[#allocation5 + $0x260] sm:$0xff] %v983_v47  ;;  %v567_v47 = vmax.f32 %v126_v39, 0.0  ;;  %v1006_v52 = vmin.f32 %v565_v41, 6.0  ;;  %v148_v41 = vld [vmem:[#allocation2 + $0x3d8] sm:$0xff] }
  0x58   :  { %1425 = vst [vmem:[#allocation5 + $0x268] sm:$0xff] %v984_v50  ;;  %v568_v50 = vmax.f32 %v127_v42, 0.0  ;;  %v1007_v55 = vmin.f32 %v566_v44, 6.0  ;;  %v149_v44 = vld [vmem:[#allocation2 + $0x3e0] sm:$0xff] }
  0x59   :  { %1426 = vst [vmem:[#allocation5 + $0x270] sm:$0xff] %v985_v53  ;;  %v569_v53 = vmax.f32 %v128_v45, 0.0  ;;  %v1008_v58 = vmin.f32 %v567_v47, 6.0  ;;  %v150_v47 = vld [vmem:[#allocation2 + $0x3e8] sm:$0xff] }
  0x5a   :  { %1427 = vst [vmem:[#allocation5 + $0x278] sm:$0xff] %v986_v56  ;;  %v570_v56 = vmax.f32 %v129_v48, 0.0  ;;  %v1009_v61 = vmin.f32 %v568_v50, 6.0  ;;  %v151_v50 = vld [vmem:[#allocation2 + $0x3f0] sm:$0xff] }
  0x5b   :  { %1428 = vst [vmem:[#allocation5 + $0x280] sm:$0xff] %v987_v59  ;;  %v571_v59 = vmax.f32 %v130_v51, 0.0  ;;  %v1010_v0 = vmin.f32 %v569_v53, 6.0  ;;  %v152_v53 = vld [vmem:[#allocation2 + $0x3f8] sm:$0xff] }
  0x5c   :  { %1429 = vst [vmem:[#allocation5 + $0x288] sm:$0xff] %v988_v62  ;;  %v572_v62 = vmax.f32 %v131_v54, 0.0  ;;  %v1011_v3 = vmin.f32 %v570_v56, 6.0  ;;  %v153_v56 = vld [vmem:[#allocation2 + $0x400] sm:$0xff] }
  0x5d   :  { %1430 = vst [vmem:[#allocation5 + $0x290] sm:$0xff] %v989_v1  ;;  %v573_v1 = vmax.f32 %v132_v57, 0.0  ;;  %v1012_v6 = vmin.f32 %v571_v59, 6.0  ;;  %v154_v59 = vld [vmem:[#allocation2 + $0x408] sm:$0xff] }
  0x5e   :  { %1431 = vst [vmem:[#allocation5 + $0x298] sm:$0xff] %v990_v4  ;;  %v574_v4 = vmax.f32 %v133_v60, 0.0  ;;  %v1013_v9 = vmin.f32 %v572_v62, 6.0  ;;  %v155_v62 = vld [vmem:[#allocation2 + $0x410] sm:$0xff] }
  0x5f   :  { %1432 = vst [vmem:[#allocation5 + $0x2a0] sm:$0xff] %v991_v7  ;;  %v575_v7 = vmax.f32 %v134_v63, 0.0  ;;  %v1014_v12 = vmin.f32 %v573_v1, 6.0  ;;  %v156_v1 = vld [vmem:[#allocation2 + $0x418] sm:$0xff] }
  0x60   :  { %1433 = vst [vmem:[#allocation5 + $0x2a8] sm:$0xff] %v992_v10  ;;  %v576_v10 = vmax.f32 %v135_v2, 0.0  ;;  %v1015_v15 = vmin.f32 %v574_v4, 6.0  ;;  %v157_v4 = vld [vmem:[#allocation2 + $0x420] sm:$0xff] }
  0x61   :  { %1434 = vst [vmem:[#allocation5 + $0x2b0] sm:$0xff] %v993_v13  ;;  %v577_v13 = vmax.f32 %v136_v5, 0.0  ;;  %v1016_v18 = vmin.f32 %v575_v7, 6.0  ;;  %v158_v7 = vld [vmem:[#allocation2 + $0x428] sm:$0xff] }
  0x62   :  { %1435 = vst [vmem:[#allocation5 + $0x2b8] sm:$0xff] %v994_v16  ;;  %v578_v16 = vmax.f32 %v137_v8, 0.0  ;;  %v1017_v21 = vmin.f32 %v576_v10, 6.0  ;;  %v159_v10 = vld [vmem:[#allocation2 + $0x430] sm:$0xff] }
  0x63   :  { %1436 = vst [vmem:[#allocation5 + $0x2c0] sm:$0xff] %v995_v19  ;;  %v579_v19 = vmax.f32 %v138_v11, 0.0  ;;  %v1018_v24 = vmin.f32 %v577_v13, 6.0  ;;  %v160_v13 = vld [vmem:[#allocation2 + $0x438] sm:$0xff] }
  0x64   :  { %1437 = vst [vmem:[#allocation5 + $0x2c8] sm:$0xff] %v996_v22  ;;  %v580_v22 = vmax.f32 %v139_v14, 0.0  ;;  %v1019_v27 = vmin.f32 %v578_v16, 6.0  ;;  %v161_v16 = vld [vmem:[#allocation2 + $0x440] sm:$0xff] }
  0x65   :  { %1438 = vst [vmem:[#allocation5 + $0x2d0] sm:$0xff] %v997_v25  ;;  %v581_v25 = vmax.f32 %v140_v17, 0.0  ;;  %v1020_v30 = vmin.f32 %v579_v19, 6.0  ;;  %v162_v19 = vld [vmem:[#allocation2 + $0x448] sm:$0xff] }
  0x66   :  { %1439 = vst [vmem:[#allocation5 + $0x2d8] sm:$0xff] %v998_v28  ;;  %v582_v28 = vmax.f32 %v141_v20, 0.0  ;;  %v1021_v33 = vmin.f32 %v580_v22, 6.0  ;;  %v163_v22 = vld [vmem:[#allocation2 + $0x450] sm:$0xff] }
  0x67   :  { %1440 = vst [vmem:[#allocation5 + $0x2e0] sm:$0xff] %v999_v31  ;;  %v583_v31 = vmax.f32 %v142_v23, 0.0  ;;  %v1022_v36 = vmin.f32 %v581_v25, 6.0  ;;  %v164_v25 = vld [vmem:[#allocation2 + $0x458] sm:$0xff] }
  0x68   :  { %1441 = vst [vmem:[#allocation5 + $0x2e8] sm:$0xff] %v1000_v34  ;;  %v584_v34 = vmax.f32 %v143_v26, 0.0  ;;  %v1023_v39 = vmin.f32 %v582_v28, 6.0  ;;  %v165_v28 = vld [vmem:[#allocation2 + $0x460] sm:$0xff] }
  0x69   :  { %1442 = vst [vmem:[#allocation5 + $0x2f0] sm:$0xff] %v1001_v37  ;;  %v585_v37 = vmax.f32 %v144_v29, 0.0  ;;  %v1024_v42 = vmin.f32 %v583_v31, 6.0  ;;  %v166_v31 = vld [vmem:[#allocation2 + $0x468] sm:$0xff] }
  0x6a   :  { %1443 = vst [vmem:[#allocation5 + $0x2f8] sm:$0xff] %v1002_v40  ;;  %v586_v40 = vmax.f32 %v145_v32, 0.0  ;;  %v1025_v45 = vmin.f32 %v584_v34, 6.0  ;;  %v167_v34 = vld [vmem:[#allocation2 + $0x470] sm:$0xff] }
  0x6b   :  { %1444 = vst [vmem:[#allocation5 + $0x300] sm:$0xff] %v1003_v43  ;;  %v587_v43 = vmax.f32 %v146_v35, 0.0  ;;  %v1026_v48 = vmin.f32 %v585_v37, 6.0  ;;  %v168_v37 = vld [vmem:[#allocation2 + $0x478] sm:$0xff] }
  0x6c   :  { %1445 = vst [vmem:[#allocation5 + $0x308] sm:$0xff] %v1004_v46  ;;  %v588_v46 = vmax.f32 %v147_v38, 0.0  ;;  %v1027_v51 = vmin.f32 %v586_v40, 6.0  ;;  %v169_v40 = vld [vmem:[#allocation2 + $0x480] sm:$0xff] }
  0x6d   :  { %1446 = vst [vmem:[#allocation5 + $0x310] sm:$0xff] %v1005_v49  ;;  %v589_v49 = vmax.f32 %v148_v41, 0.0  ;;  %v1028_v54 = vmin.f32 %v587_v43, 6.0  ;;  %v170_v43 = vld [vmem:[#allocation2 + $0x488] sm:$0xff] }
  0x6e   :  { %1447 = vst [vmem:[#allocation5 + $0x318] sm:$0xff] %v1006_v52  ;;  %v590_v52 = vmax.f32 %v149_v44, 0.0  ;;  %v1029_v57 = vmin.f32 %v588_v46, 6.0  ;;  %v171_v46 = vld [vmem:[#allocation2 + $0x490] sm:$0xff] }
  0x6f   :  { %1448 = vst [vmem:[#allocation5 + $0x320] sm:$0xff] %v1007_v55  ;;  %v591_v55 = vmax.f32 %v150_v47, 0.0  ;;  %v1030_v60 = vmin.f32 %v589_v49, 6.0  ;;  %v172_v49 = vld [vmem:[#allocation2 + $0x498] sm:$0xff] }
  0x70   :  { %1449 = vst [vmem:[#allocation5 + $0x328] sm:$0xff] %v1008_v58  ;;  %v592_v58 = vmax.f32 %v151_v50, 0.0  ;;  %v1031_v63 = vmin.f32 %v590_v52, 6.0  ;;  %v173_v52 = vld [vmem:[#allocation2 + $0x4a0] sm:$0xff] }
  0x71   :  { %1450 = vst [vmem:[#allocation5 + $0x330] sm:$0xff] %v1009_v61  ;;  %v593_v61 = vmax.f32 %v152_v53, 0.0  ;;  %v1032_v2 = vmin.f32 %v591_v55, 6.0  ;;  %v174_v55 = vld [vmem:[#allocation2 + $0x4a8] sm:$0xff] }
  0x72   :  { %1451 = vst [vmem:[#allocation5 + $0x338] sm:$0xff] %v1010_v0  ;;  %v594_v0 = vmax.f32 %v153_v56, 0.0  ;;  %v1033_v5 = vmin.f32 %v592_v58, 6.0  ;;  %v175_v58 = vld [vmem:[#allocation2 + $0x4b0] sm:$0xff] }
  0x73   :  { %1452 = vst [vmem:[#allocation5 + $0x340] sm:$0xff] %v1011_v3  ;;  %v595_v3 = vmax.f32 %v154_v59, 0.0  ;;  %v1034_v8 = vmin.f32 %v593_v61, 6.0  ;;  %v176_v61 = vld [vmem:[#allocation2 + $0x4b8] sm:$0xff] }
  0x74   :  { %1453 = vst [vmem:[#allocation5 + $0x348] sm:$0xff] %v1012_v6  ;;  %v596_v6 = vmax.f32 %v155_v62, 0.0  ;;  %v1035_v11 = vmin.f32 %v594_v0, 6.0  ;;  %v177_v0 = vld [vmem:[#allocation2 + $0x4c0] sm:$0xff] }
  0x75   :  { %1454 = vst [vmem:[#allocation5 + $0x350] sm:$0xff] %v1013_v9  ;;  %v597_v9 = vmax.f32 %v156_v1, 0.0  ;;  %v1036_v14 = vmin.f32 %v595_v3, 6.0  ;;  %v178_v3 = vld [vmem:[#allocation2 + $0x4c8] sm:$0xff] }
  0x76   :  { %1455 = vst [vmem:[#allocation5 + $0x358] sm:$0xff] %v1014_v12  ;;  %v598_v12 = vmax.f32 %v157_v4, 0.0  ;;  %v1037_v17 = vmin.f32 %v596_v6, 6.0  ;;  %v179_v6 = vld [vmem:[#allocation2 + $0x4d0] sm:$0xff] }
  0x77   :  { %1456 = vst [vmem:[#allocation5 + $0x360] sm:$0xff] %v1015_v15  ;;  %v599_v15 = vmax.f32 %v158_v7, 0.0  ;;  %v1038_v20 = vmin.f32 %v597_v9, 6.0  ;;  %v180_v9 = vld [vmem:[#allocation2 + $0x4d8] sm:$0xff] }
  0x78   :  { %1457 = vst [vmem:[#allocation5 + $0x368] sm:$0xff] %v1016_v18  ;;  %v600_v18 = vmax.f32 %v159_v10, 0.0  ;;  %v1039_v23 = vmin.f32 %v598_v12, 6.0  ;;  %v181_v12 = vld [vmem:[#allocation2 + $0x4e0] sm:$0xff] }
  0x79   :  { %1458 = vst [vmem:[#allocation5 + $0x370] sm:$0xff] %v1017_v21  ;;  %v601_v21 = vmax.f32 %v160_v13, 0.0  ;;  %v1040_v26 = vmin.f32 %v599_v15, 6.0  ;;  %v182_v15 = vld [vmem:[#allocation2 + $0x4e8] sm:$0xff] }
  0x7a   :  { %1459 = vst [vmem:[#allocation5 + $0x378] sm:$0xff] %v1018_v24  ;;  %v602_v24 = vmax.f32 %v161_v16, 0.0  ;;  %v1041_v29 = vmin.f32 %v600_v18, 6.0  ;;  %v183_v18 = vld [vmem:[#allocation2 + $0x4f0] sm:$0xff] }
  0x7b   :  { %1460 = vst [vmem:[#allocation5 + $0x380] sm:$0xff] %v1019_v27  ;;  %v603_v27 = vmax.f32 %v162_v19, 0.0  ;;  %v1042_v32 = vmin.f32 %v601_v21, 6.0  ;;  %v184_v21 = vld [vmem:[#allocation2 + $0x4f8] sm:$0xff] }
  0x7c   :  { %1461 = vst [vmem:[#allocation5 + $0x388] sm:$0xff] %v1020_v30  ;;  %v604_v30 = vmax.f32 %v163_v22, 0.0  ;;  %v1043_v35 = vmin.f32 %v602_v24, 6.0  ;;  %v185_v24 = vld [vmem:[#allocation2 + $0x500] sm:$0xff] }
  0x7d   :  { %1462 = vst [vmem:[#allocation5 + $0x390] sm:$0xff] %v1021_v33  ;;  %v605_v33 = vmax.f32 %v164_v25, 0.0  ;;  %v1044_v38 = vmin.f32 %v603_v27, 6.0  ;;  %v186_v27 = vld [vmem:[#allocation2 + $0x508] sm:$0xff] }
  0x7e   :  { %1463 = vst [vmem:[#allocation5 + $0x398] sm:$0xff] %v1022_v36  ;;  %v606_v36 = vmax.f32 %v165_v28, 0.0  ;;  %v1045_v41 = vmin.f32 %v604_v30, 6.0  ;;  %v187_v30 = vld [vmem:[#allocation2 + $0x510] sm:$0xff] }
  0x7f   :  { %1464 = vst [vmem:[#allocation5 + $0x3a0] sm:$0xff] %v1023_v39  ;;  %v607_v39 = vmax.f32 %v166_v31, 0.0  ;;  %v1046_v44 = vmin.f32 %v605_v33, 6.0  ;;  %v188_v33 = vld [vmem:[#allocation2 + $0x518] sm:$0xff] }
  0x80   :  { %1465 = vst [vmem:[#allocation5 + $0x3a8] sm:$0xff] %v1024_v42  ;;  %v608_v42 = vmax.f32 %v167_v34, 0.0  ;;  %v1047_v47 = vmin.f32 %v606_v36, 6.0  ;;  %v189_v36 = vld [vmem:[#allocation2 + $0x520] sm:$0xff] }
  0x81   :  { %1466 = vst [vmem:[#allocation5 + $0x3b0] sm:$0xff] %v1025_v45  ;;  %v609_v45 = vmax.f32 %v168_v37, 0.0  ;;  %v1048_v50 = vmin.f32 %v607_v39, 6.0  ;;  %v190_v39 = vld [vmem:[#allocation2 + $0x528] sm:$0xff] }
  0x82   :  { %1467 = vst [vmem:[#allocation5 + $0x3b8] sm:$0xff] %v1026_v48  ;;  %v610_v48 = vmax.f32 %v169_v40, 0.0  ;;  %v1049_v53 = vmin.f32 %v608_v42, 6.0  ;;  %v191_v42 = vld [vmem:[#allocation2 + $0x530] sm:$0xff] }
  0x83   :  { %1468 = vst [vmem:[#allocation5 + $0x3c0] sm:$0xff] %v1027_v51  ;;  %v611_v51 = vmax.f32 %v170_v43, 0.0  ;;  %v1050_v56 = vmin.f32 %v609_v45, 6.0  ;;  %v192_v45 = vld [vmem:[#allocation2 + $0x538] sm:$0xff] }
  0x84   :  { %1469 = vst [vmem:[#allocation5 + $0x3c8] sm:$0xff] %v1028_v54  ;;  %v612_v54 = vmax.f32 %v171_v46, 0.0  ;;  %v1051_v59 = vmin.f32 %v610_v48, 6.0  ;;  %v193_v48 = vld [vmem:[#allocation2 + $0x540] sm:$0xff] }
  0x85   :  { %1470 = vst [vmem:[#allocation5 + $0x3d0] sm:$0xff] %v1029_v57  ;;  %v613_v57 = vmax.f32 %v172_v49, 0.0  ;;  %v1052_v62 = vmin.f32 %v611_v51, 6.0  ;;  %v194_v51 = vld [vmem:[#allocation2 + $0x548] sm:$0xff] }
  0x86   :  { %1471 = vst [vmem:[#allocation5 + $0x3d8] sm:$0xff] %v1030_v60  ;;  %v614_v60 = vmax.f32 %v173_v52, 0.0  ;;  %v1053_v1 = vmin.f32 %v612_v54, 6.0  ;;  %v195_v54 = vld [vmem:[#allocation2 + $0x550] sm:$0xff] }
  0x87   :  { %1472 = vst [vmem:[#allocation5 + $0x3e0] sm:$0xff] %v1031_v63  ;;  %v615_v63 = vmax.f32 %v174_v55, 0.0  ;;  %v1054_v4 = vmin.f32 %v613_v57, 6.0  ;;  %v196_v57 = vld [vmem:[#allocation2 + $0x558] sm:$0xff] }
  0x88   :  { %1473 = vst [vmem:[#allocation5 + $0x3e8] sm:$0xff] %v1032_v2  ;;  %v616_v2 = vmax.f32 %v175_v58, 0.0  ;;  %v1055_v7 = vmin.f32 %v614_v60, 6.0  ;;  %v197_v60 = vld [vmem:[#allocation2 + $0x560] sm:$0xff] }
  0x89   :  { %1474 = vst [vmem:[#allocation5 + $0x3f0] sm:$0xff] %v1033_v5  ;;  %v617_v5 = vmax.f32 %v176_v61, 0.0  ;;  %v1056_v10 = vmin.f32 %v615_v63, 6.0  ;;  %v198_v63 = vld [vmem:[#allocation2 + $0x568] sm:$0xff] }
  0x8a   :  { %1475 = vst [vmem:[#allocation5 + $0x3f8] sm:$0xff] %v1034_v8  ;;  %v618_v8 = vmax.f32 %v177_v0, 0.0  ;;  %v1057_v13 = vmin.f32 %v616_v2, 6.0  ;;  %v199_v2 = vld [vmem:[#allocation2 + $0x570] sm:$0xff] }
  0x8b   :  { %1476 = vst [vmem:[#allocation5 + $0x400] sm:$0xff] %v1035_v11  ;;  %v619_v11 = vmax.f32 %v178_v3, 0.0  ;;  %v1058_v16 = vmin.f32 %v617_v5, 6.0  ;;  %v200_v5 = vld [vmem:[#allocation2 + $0x578] sm:$0xff] }
  0x8c   :  { %1477 = vst [vmem:[#allocation5 + $0x408] sm:$0xff] %v1036_v14  ;;  %v620_v14 = vmax.f32 %v179_v6, 0.0  ;;  %v1059_v19 = vmin.f32 %v618_v8, 6.0  ;;  %v201_v8 = vld [vmem:[#allocation2 + $0x580] sm:$0xff] }
  0x8d   :  { %1478 = vst [vmem:[#allocation5 + $0x410] sm:$0xff] %v1037_v17  ;;  %v621_v17 = vmax.f32 %v180_v9, 0.0  ;;  %v1060_v22 = vmin.f32 %v619_v11, 6.0  ;;  %v202_v11 = vld [vmem:[#allocation2 + $0x588] sm:$0xff] }
  0x8e   :  { %1479 = vst [vmem:[#allocation5 + $0x418] sm:$0xff] %v1038_v20  ;;  %v622_v20 = vmax.f32 %v181_v12, 0.0  ;;  %v1061_v25 = vmin.f32 %v620_v14, 6.0  ;;  %v203_v14 = vld [vmem:[#allocation2 + $0x590] sm:$0xff] }
  0x8f   :  { %1480 = vst [vmem:[#allocation5 + $0x420] sm:$0xff] %v1039_v23  ;;  %v623_v23 = vmax.f32 %v182_v15, 0.0  ;;  %v1062_v28 = vmin.f32 %v621_v17, 6.0  ;;  %v204_v17 = vld [vmem:[#allocation2 + $0x598] sm:$0xff] }
  0x90   :  { %1481 = vst [vmem:[#allocation5 + $0x428] sm:$0xff] %v1040_v26  ;;  %v624_v26 = vmax.f32 %v183_v18, 0.0  ;;  %v1063_v31 = vmin.f32 %v622_v20, 6.0  ;;  %v205_v20 = vld [vmem:[#allocation2 + $0x5a0] sm:$0xff] }
  0x91   :  { %1482 = vst [vmem:[#allocation5 + $0x430] sm:$0xff] %v1041_v29  ;;  %v625_v29 = vmax.f32 %v184_v21, 0.0  ;;  %v1064_v34 = vmin.f32 %v623_v23, 6.0  ;;  %v206_v23 = vld [vmem:[#allocation2 + $0x5a8] sm:$0xff] }
  0x92   :  { %1483 = vst [vmem:[#allocation5 + $0x438] sm:$0xff] %v1042_v32  ;;  %v626_v32 = vmax.f32 %v185_v24, 0.0  ;;  %v1065_v37 = vmin.f32 %v624_v26, 6.0  ;;  %v207_v26 = vld [vmem:[#allocation2 + $0x5b0] sm:$0xff] }
  0x93   :  { %1484 = vst [vmem:[#allocation5 + $0x440] sm:$0xff] %v1043_v35  ;;  %v627_v35 = vmax.f32 %v186_v27, 0.0  ;;  %v1066_v40 = vmin.f32 %v625_v29, 6.0  ;;  %v208_v29 = vld [vmem:[#allocation2 + $0x5b8] sm:$0xff] }
  0x94   :  { %1485 = vst [vmem:[#allocation5 + $0x448] sm:$0xff] %v1044_v38  ;;  %v628_v38 = vmax.f32 %v187_v30, 0.0  ;;  %v1067_v43 = vmin.f32 %v626_v32, 6.0  ;;  %v209_v32 = vld [vmem:[#allocation2 + $0x5c0] sm:$0xff] }
  0x95   :  { %1486 = vst [vmem:[#allocation5 + $0x450] sm:$0xff] %v1045_v41  ;;  %v629_v41 = vmax.f32 %v188_v33, 0.0  ;;  %v1068_v46 = vmin.f32 %v627_v35, 6.0  ;;  %v210_v35 = vld [vmem:[#allocation2 + $0x5c8] sm:$0xff] }
  0x96   :  { %1487 = vst [vmem:[#allocation5 + $0x458] sm:$0xff] %v1046_v44  ;;  %v630_v44 = vmax.f32 %v189_v36, 0.0  ;;  %v1069_v49 = vmin.f32 %v628_v38, 6.0  ;;  %v211_v38 = vld [vmem:[#allocation2 + $0x5d0] sm:$0xff] }
  0x97   :  { %1488 = vst [vmem:[#allocation5 + $0x460] sm:$0xff] %v1047_v47  ;;  %v631_v47 = vmax.f32 %v190_v39, 0.0  ;;  %v1070_v52 = vmin.f32 %v629_v41, 6.0  ;;  %v212_v41 = vld [vmem:[#allocation2 + $0x5d8] sm:$0xff] }
  0x98   :  { %1489 = vst [vmem:[#allocation5 + $0x468] sm:$0xff] %v1048_v50  ;;  %v632_v50 = vmax.f32 %v191_v42, 0.0  ;;  %v1071_v55 = vmin.f32 %v630_v44, 6.0  ;;  %v213_v44 = vld [vmem:[#allocation2 + $0x5e0] sm:$0xff] }
  0x99   :  { %1490 = vst [vmem:[#allocation5 + $0x470] sm:$0xff] %v1049_v53  ;;  %v633_v53 = vmax.f32 %v192_v45, 0.0  ;;  %v1072_v58 = vmin.f32 %v631_v47, 6.0  ;;  %v214_v47 = vld [vmem:[#allocation2 + $0x5e8] sm:$0xff] }
  0x9a   :  { %1491 = vst [vmem:[#allocation5 + $0x478] sm:$0xff] %v1050_v56  ;;  %v634_v56 = vmax.f32 %v193_v48, 0.0  ;;  %v1073_v61 = vmin.f32 %v632_v50, 6.0  ;;  %v215_v50 = vld [vmem:[#allocation2 + $0x5f0] sm:$0xff] }
  0x9b   :  { %1492 = vst [vmem:[#allocation5 + $0x480] sm:$0xff] %v1051_v59  ;;  %v635_v59 = vmax.f32 %v194_v51, 0.0  ;;  %v1074_v0 = vmin.f32 %v633_v53, 6.0  ;;  %v216_v53 = vld [vmem:[#allocation2 + $0x5f8] sm:$0xff] }
  0x9c   :  { %1493 = vst [vmem:[#allocation5 + $0x488] sm:$0xff] %v1052_v62  ;;  %v636_v62 = vmax.f32 %v195_v54, 0.0  ;;  %v1075_v3 = vmin.f32 %v634_v56, 6.0  ;;  %v217_v56 = vld [vmem:[#allocation2 + $0x600] sm:$0xff] }
  0x9d   :  { %1494 = vst [vmem:[#allocation5 + $0x490] sm:$0xff] %v1053_v1  ;;  %v637_v1 = vmax.f32 %v196_v57, 0.0  ;;  %v1076_v6 = vmin.f32 %v635_v59, 6.0  ;;  %v218_v59 = vld [vmem:[#allocation2 + $0x608] sm:$0xff] }
  0x9e   :  { %1495 = vst [vmem:[#allocation5 + $0x498] sm:$0xff] %v1054_v4  ;;  %v638_v4 = vmax.f32 %v197_v60, 0.0  ;;  %v1077_v9 = vmin.f32 %v636_v62, 6.0  ;;  %v219_v62 = vld [vmem:[#allocation2 + $0x610] sm:$0xff] }
  0x9f   :  { %1496 = vst [vmem:[#allocation5 + $0x4a0] sm:$0xff] %v1055_v7  ;;  %v639_v7 = vmax.f32 %v198_v63, 0.0  ;;  %v1078_v12 = vmin.f32 %v637_v1, 6.0  ;;  %v220_v1 = vld [vmem:[#allocation2 + $0x618] sm:$0xff] }
  0xa0   :  { %1497 = vst [vmem:[#allocation5 + $0x4a8] sm:$0xff] %v1056_v10  ;;  %v640_v10 = vmax.f32 %v199_v2, 0.0  ;;  %v1079_v15 = vmin.f32 %v638_v4, 6.0  ;;  %v221_v4 = vld [vmem:[#allocation2 + $0x620] sm:$0xff] }
  0xa1   :  { %1498 = vst [vmem:[#allocation5 + $0x4b0] sm:$0xff] %v1057_v13  ;;  %v641_v13 = vmax.f32 %v200_v5, 0.0  ;;  %v1080_v18 = vmin.f32 %v639_v7, 6.0  ;;  %v222_v7 = vld [vmem:[#allocation2 + $0x628] sm:$0xff] }
  0xa2   :  { %1499 = vst [vmem:[#allocation5 + $0x4b8] sm:$0xff] %v1058_v16  ;;  %v642_v16 = vmax.f32 %v201_v8, 0.0  ;;  %v1081_v21 = vmin.f32 %v640_v10, 6.0  ;;  %v223_v10 = vld [vmem:[#allocation2 + $0x630] sm:$0xff] }
  0xa3   :  { %1500 = vst [vmem:[#allocation5 + $0x4c0] sm:$0xff] %v1059_v19  ;;  %v643_v19 = vmax.f32 %v202_v11, 0.0  ;;  %v1082_v24 = vmin.f32 %v641_v13, 6.0  ;;  %v224_v13 = vld [vmem:[#allocation2 + $0x638] sm:$0xff] }
  0xa4   :  { %1501 = vst [vmem:[#allocation5 + $0x4c8] sm:$0xff] %v1060_v22  ;;  %v644_v22 = vmax.f32 %v203_v14, 0.0  ;;  %v1083_v27 = vmin.f32 %v642_v16, 6.0  ;;  %v225_v16 = vld [vmem:[#allocation2 + $0x640] sm:$0xff] }
  0xa5   :  { %1502 = vst [vmem:[#allocation5 + $0x4d0] sm:$0xff] %v1061_v25  ;;  %v645_v25 = vmax.f32 %v204_v17, 0.0  ;;  %v1084_v30 = vmin.f32 %v643_v19, 6.0  ;;  %v226_v19 = vld [vmem:[#allocation2 + $0x648] sm:$0xff] }
  0xa6   :  { %1503 = vst [vmem:[#allocation5 + $0x4d8] sm:$0xff] %v1062_v28  ;;  %v646_v28 = vmax.f32 %v205_v20, 0.0  ;;  %v1085_v33 = vmin.f32 %v644_v22, 6.0  ;;  %v227_v22 = vld [vmem:[#allocation2 + $0x650] sm:$0xff] }
  0xa7   :  { %1504 = vst [vmem:[#allocation5 + $0x4e0] sm:$0xff] %v1063_v31  ;;  %v647_v31 = vmax.f32 %v206_v23, 0.0  ;;  %v1086_v36 = vmin.f32 %v645_v25, 6.0  ;;  %v228_v25 = vld [vmem:[#allocation2 + $0x658] sm:$0xff] }
  0xa8   :  { %1505 = vst [vmem:[#allocation5 + $0x4e8] sm:$0xff] %v1064_v34  ;;  %v648_v34 = vmax.f32 %v207_v26, 0.0  ;;  %v1087_v39 = vmin.f32 %v646_v28, 6.0  ;;  %v229_v28 = vld [vmem:[#allocation2 + $0x660] sm:$0xff] }
  0xa9   :  { %1506 = vst [vmem:[#allocation5 + $0x4f0] sm:$0xff] %v1065_v37  ;;  %v649_v37 = vmax.f32 %v208_v29, 0.0  ;;  %v1088_v42 = vmin.f32 %v647_v31, 6.0  ;;  %v230_v31 = vld [vmem:[#allocation2 + $0x668] sm:$0xff] }
  0xaa   :  { %1507 = vst [vmem:[#allocation5 + $0x4f8] sm:$0xff] %v1066_v40  ;;  %v650_v40 = vmax.f32 %v209_v32, 0.0  ;;  %v1089_v45 = vmin.f32 %v648_v34, 6.0  ;;  %v231_v34 = vld [vmem:[#allocation2 + $0x670] sm:$0xff] }
  0xab   :  { %1508 = vst [vmem:[#allocation5 + $0x500] sm:$0xff] %v1067_v43  ;;  %v651_v43 = vmax.f32 %v210_v35, 0.0  ;;  %v1090_v48 = vmin.f32 %v649_v37, 6.0  ;;  %v232_v37 = vld [vmem:[#allocation2 + $0x678] sm:$0xff] }
  0xac   :  { %1509 = vst [vmem:[#allocation5 + $0x508] sm:$0xff] %v1068_v46  ;;  %v652_v46 = vmax.f32 %v211_v38, 0.0  ;;  %v1091_v51 = vmin.f32 %v650_v40, 6.0  ;;  %v233_v40 = vld [vmem:[#allocation2 + $0x680] sm:$0xff] }
  0xad   :  { %1510 = vst [vmem:[#allocation5 + $0x510] sm:$0xff] %v1069_v49  ;;  %v653_v49 = vmax.f32 %v212_v41, 0.0  ;;  %v1092_v54 = vmin.f32 %v651_v43, 6.0  ;;  %v234_v43 = vld [vmem:[#allocation2 + $0x688] sm:$0xff] }
  0xae   :  { %1511 = vst [vmem:[#allocation5 + $0x518] sm:$0xff] %v1070_v52  ;;  %v654_v52 = vmax.f32 %v213_v44, 0.0  ;;  %v1093_v57 = vmin.f32 %v652_v46, 6.0  ;;  %v235_v46 = vld [vmem:[#allocation2 + $0x690] sm:$0xff] }
  0xaf   :  { %1512 = vst [vmem:[#allocation5 + $0x520] sm:$0xff] %v1071_v55  ;;  %v655_v55 = vmax.f32 %v214_v47, 0.0  ;;  %v1094_v60 = vmin.f32 %v653_v49, 6.0  ;;  %v236_v49 = vld [vmem:[#allocation2 + $0x698] sm:$0xff] }
  0xb0   :  { %1513 = vst [vmem:[#allocation5 + $0x528] sm:$0xff] %v1072_v58  ;;  %v656_v58 = vmax.f32 %v215_v50, 0.0  ;;  %v1095_v63 = vmin.f32 %v654_v52, 6.0  ;;  %v237_v52 = vld [vmem:[#allocation2 + $0x6a0] sm:$0xff] }
  0xb1   :  { %1514 = vst [vmem:[#allocation5 + $0x530] sm:$0xff] %v1073_v61  ;;  %v657_v61 = vmax.f32 %v216_v53, 0.0  ;;  %v1096_v2 = vmin.f32 %v655_v55, 6.0  ;;  %v238_v55 = vld [vmem:[#allocation2 + $0x6a8] sm:$0xff] }
  0xb2   :  { %1515 = vst [vmem:[#allocation5 + $0x538] sm:$0xff] %v1074_v0  ;;  %v658_v0 = vmax.f32 %v217_v56, 0.0  ;;  %v1097_v5 = vmin.f32 %v656_v58, 6.0  ;;  %v239_v58 = vld [vmem:[#allocation2 + $0x6b0] sm:$0xff] }
  0xb3   :  { %1516 = vst [vmem:[#allocation5 + $0x540] sm:$0xff] %v1075_v3  ;;  %v659_v3 = vmax.f32 %v218_v59, 0.0  ;;  %v1098_v8 = vmin.f32 %v657_v61, 6.0  ;;  %v240_v61 = vld [vmem:[#allocation2 + $0x6b8] sm:$0xff] }
  0xb4   :  { %1517 = vst [vmem:[#allocation5 + $0x548] sm:$0xff] %v1076_v6  ;;  %v660_v6 = vmax.f32 %v219_v62, 0.0  ;;  %v1099_v11 = vmin.f32 %v658_v0, 6.0  ;;  %v241_v0 = vld [vmem:[#allocation2 + $0x6c0] sm:$0xff] }
  0xb5   :  { %1518 = vst [vmem:[#allocation5 + $0x550] sm:$0xff] %v1077_v9  ;;  %v661_v9 = vmax.f32 %v220_v1, 0.0  ;;  %v1100_v14 = vmin.f32 %v659_v3, 6.0  ;;  %v242_v3 = vld [vmem:[#allocation2 + $0x6c8] sm:$0xff] }
  0xb6   :  { %1519 = vst [vmem:[#allocation5 + $0x558] sm:$0xff] %v1078_v12  ;;  %v662_v12 = vmax.f32 %v221_v4, 0.0  ;;  %v1101_v17 = vmin.f32 %v660_v6, 6.0  ;;  %v243_v6 = vld [vmem:[#allocation2 + $0x6d0] sm:$0xff] }
  0xb7   :  { %1520 = vst [vmem:[#allocation5 + $0x560] sm:$0xff] %v1079_v15  ;;  %v663_v15 = vmax.f32 %v222_v7, 0.0  ;;  %v1102_v20 = vmin.f32 %v661_v9, 6.0  ;;  %v244_v9 = vld [vmem:[#allocation2 + $0x6d8] sm:$0xff] }
  0xb8   :  { %1521 = vst [vmem:[#allocation5 + $0x568] sm:$0xff] %v1080_v18  ;;  %v664_v18 = vmax.f32 %v223_v10, 0.0  ;;  %v1103_v23 = vmin.f32 %v662_v12, 6.0  ;;  %v245_v12 = vld [vmem:[#allocation2 + $0x6e0] sm:$0xff] }
  0xb9   :  { %1522 = vst [vmem:[#allocation5 + $0x570] sm:$0xff] %v1081_v21  ;;  %v665_v21 = vmax.f32 %v224_v13, 0.0  ;;  %v1104_v26 = vmin.f32 %v663_v15, 6.0  ;;  %v246_v15 = vld [vmem:[#allocation2 + $0x6e8] sm:$0xff] }
  0xba   :  { %1523 = vst [vmem:[#allocation5 + $0x578] sm:$0xff] %v1082_v24  ;;  %v666_v24 = vmax.f32 %v225_v16, 0.0  ;;  %v1105_v29 = vmin.f32 %v664_v18, 6.0  ;;  %v247_v18 = vld [vmem:[#allocation2 + $0x6f0] sm:$0xff] }
  0xbb   :  { %1524 = vst [vmem:[#allocation5 + $0x580] sm:$0xff] %v1083_v27  ;;  %v667_v27 = vmax.f32 %v226_v19, 0.0  ;;  %v1106_v32 = vmin.f32 %v665_v21, 6.0  ;;  %v248_v21 = vld [vmem:[#allocation2 + $0x6f8] sm:$0xff] }
  0xbc   :  { %1525 = vst [vmem:[#allocation5 + $0x588] sm:$0xff] %v1084_v30  ;;  %v668_v30 = vmax.f32 %v227_v22, 0.0  ;;  %v1107_v35 = vmin.f32 %v666_v24, 6.0  ;;  %v249_v24 = vld [vmem:[#allocation2 + $0x700] sm:$0xff] }
  0xbd   :  { %1526 = vst [vmem:[#allocation5 + $0x590] sm:$0xff] %v1085_v33  ;;  %v669_v33 = vmax.f32 %v228_v25, 0.0  ;;  %v1108_v38 = vmin.f32 %v667_v27, 6.0  ;;  %v250_v27 = vld [vmem:[#allocation2 + $0x708] sm:$0xff] }
  0xbe   :  { %1527 = vst [vmem:[#allocation5 + $0x598] sm:$0xff] %v1086_v36  ;;  %v670_v36 = vmax.f32 %v229_v28, 0.0  ;;  %v1109_v41 = vmin.f32 %v668_v30, 6.0  ;;  %v251_v30 = vld [vmem:[#allocation2 + $0x710] sm:$0xff] }
  0xbf   :  { %1528 = vst [vmem:[#allocation5 + $0x5a0] sm:$0xff] %v1087_v39  ;;  %v671_v39 = vmax.f32 %v230_v31, 0.0  ;;  %v1110_v44 = vmin.f32 %v669_v33, 6.0  ;;  %v252_v33 = vld [vmem:[#allocation2 + $0x718] sm:$0xff] }
  0xc0   :  { %1529 = vst [vmem:[#allocation5 + $0x5a8] sm:$0xff] %v1088_v42  ;;  %v672_v42 = vmax.f32 %v231_v34, 0.0  ;;  %v1111_v47 = vmin.f32 %v670_v36, 6.0  ;;  %v253_v36 = vld [vmem:[#allocation2 + $0x720] sm:$0xff] }
  0xc1   :  { %1530 = vst [vmem:[#allocation5 + $0x5b0] sm:$0xff] %v1089_v45  ;;  %v673_v45 = vmax.f32 %v232_v37, 0.0  ;;  %v1112_v50 = vmin.f32 %v671_v39, 6.0  ;;  %v254_v39 = vld [vmem:[#allocation2 + $0x728] sm:$0xff] }
  0xc2   :  { %1531 = vst [vmem:[#allocation5 + $0x5b8] sm:$0xff] %v1090_v48  ;;  %v674_v48 = vmax.f32 %v233_v40, 0.0  ;;  %v1113_v53 = vmin.f32 %v672_v42, 6.0  ;;  %v255_v42 = vld [vmem:[#allocation2 + $0x730] sm:$0xff] }
  0xc3   :  { %1532 = vst [vmem:[#allocation5 + $0x5c0] sm:$0xff] %v1091_v51  ;;  %v675_v51 = vmax.f32 %v234_v43, 0.0  ;;  %v1114_v56 = vmin.f32 %v673_v45, 6.0  ;;  %v256_v45 = vld [vmem:[#allocation2 + $0x738] sm:$0xff] }
  0xc4   :  { %1533 = vst [vmem:[#allocation5 + $0x5c8] sm:$0xff] %v1092_v54  ;;  %v676_v54 = vmax.f32 %v235_v46, 0.0  ;;  %v1115_v59 = vmin.f32 %v674_v48, 6.0  ;;  %v257_v48 = vld [vmem:[#allocation2 + $0x740] sm:$0xff] }
  0xc5   :  { %1534 = vst [vmem:[#allocation5 + $0x5d0] sm:$0xff] %v1093_v57  ;;  %v677_v57 = vmax.f32 %v236_v49, 0.0  ;;  %v1116_v62 = vmin.f32 %v675_v51, 6.0  ;;  %v258_v51 = vld [vmem:[#allocation2 + $0x748] sm:$0xff] }
  0xc6   :  { %1535 = vst [vmem:[#allocation5 + $0x5d8] sm:$0xff] %v1094_v60  ;;  %v678_v60 = vmax.f32 %v237_v52, 0.0  ;;  %v1117_v1 = vmin.f32 %v676_v54, 6.0  ;;  %v259_v54 = vld [vmem:[#allocation2 + $0x750] sm:$0xff] }
  0xc7   :  { %1536 = vst [vmem:[#allocation5 + $0x5e0] sm:$0xff] %v1095_v63  ;;  %v679_v63 = vmax.f32 %v238_v55, 0.0  ;;  %v1118_v4 = vmin.f32 %v677_v57, 6.0  ;;  %v260_v57 = vld [vmem:[#allocation2 + $0x758] sm:$0xff] }
  0xc8   :  { %1537 = vst [vmem:[#allocation5 + $0x5e8] sm:$0xff] %v1096_v2  ;;  %v680_v2 = vmax.f32 %v239_v58, 0.0  ;;  %v1119_v7 = vmin.f32 %v678_v60, 6.0  ;;  %v261_v60 = vld [vmem:[#allocation2 + $0x760] sm:$0xff] }
  0xc9   :  { %1538 = vst [vmem:[#allocation5 + $0x5f0] sm:$0xff] %v1097_v5  ;;  %v681_v5 = vmax.f32 %v240_v61, 0.0  ;;  %v1120_v10 = vmin.f32 %v679_v63, 6.0  ;;  %v262_v63 = vld [vmem:[#allocation2 + $0x768] sm:$0xff] }
  0xca   :  { %1539 = vst [vmem:[#allocation5 + $0x5f8] sm:$0xff] %v1098_v8  ;;  %v682_v8 = vmax.f32 %v241_v0, 0.0  ;;  %v1121_v13 = vmin.f32 %v680_v2, 6.0  ;;  %v263_v2 = vld [vmem:[#allocation2 + $0x770] sm:$0xff] }
  0xcb   :  { %1540 = vst [vmem:[#allocation5 + $0x600] sm:$0xff] %v1099_v11  ;;  %v683_v11 = vmax.f32 %v242_v3, 0.0  ;;  %v1122_v16 = vmin.f32 %v681_v5, 6.0  ;;  %v264_v5 = vld [vmem:[#allocation2 + $0x778] sm:$0xff] }
  0xcc   :  { %1541 = vst [vmem:[#allocation5 + $0x608] sm:$0xff] %v1100_v14  ;;  %v684_v14 = vmax.f32 %v243_v6, 0.0  ;;  %v1123_v19 = vmin.f32 %v682_v8, 6.0  ;;  %v265_v8 = vld [vmem:[#allocation2 + $0x780] sm:$0xff] }
  0xcd   :  { %1542 = vst [vmem:[#allocation5 + $0x610] sm:$0xff] %v1101_v17  ;;  %v685_v17 = vmax.f32 %v244_v9, 0.0  ;;  %v1124_v22 = vmin.f32 %v683_v11, 6.0  ;;  %v266_v11 = vld [vmem:[#allocation2 + $0x788] sm:$0xff] }
  0xce   :  { %1543 = vst [vmem:[#allocation5 + $0x618] sm:$0xff] %v1102_v20  ;;  %v686_v20 = vmax.f32 %v245_v12, 0.0  ;;  %v1125_v25 = vmin.f32 %v684_v14, 6.0  ;;  %v267_v14 = vld [vmem:[#allocation2 + $0x790] sm:$0xff] }
  0xcf   :  { %1544 = vst [vmem:[#allocation5 + $0x620] sm:$0xff] %v1103_v23  ;;  %v687_v23 = vmax.f32 %v246_v15, 0.0  ;;  %v1126_v28 = vmin.f32 %v685_v17, 6.0  ;;  %v268_v17 = vld [vmem:[#allocation2 + $0x798] sm:$0xff] }
  0xd0   :  { %1545 = vst [vmem:[#allocation5 + $0x628] sm:$0xff] %v1104_v26  ;;  %v688_v26 = vmax.f32 %v247_v18, 0.0  ;;  %v1127_v31 = vmin.f32 %v686_v20, 6.0  ;;  %v269_v20 = vld [vmem:[#allocation2 + $0x7a0] sm:$0xff] }
  0xd1   :  { %1546 = vst [vmem:[#allocation5 + $0x630] sm:$0xff] %v1105_v29  ;;  %v689_v29 = vmax.f32 %v248_v21, 0.0  ;;  %v1128_v34 = vmin.f32 %v687_v23, 6.0  ;;  %v270_v23 = vld [vmem:[#allocation2 + $0x7a8] sm:$0xff] }
  0xd2   :  { %1547 = vst [vmem:[#allocation5 + $0x638] sm:$0xff] %v1106_v32  ;;  %v690_v32 = vmax.f32 %v249_v24, 0.0  ;;  %v1129_v37 = vmin.f32 %v688_v26, 6.0  ;;  %v271_v26 = vld [vmem:[#allocation2 + $0x7b0] sm:$0xff] }
  0xd3   :  { %1548 = vst [vmem:[#allocation5 + $0x640] sm:$0xff] %v1107_v35  ;;  %v691_v35 = vmax.f32 %v250_v27, 0.0  ;;  %v1130_v40 = vmin.f32 %v689_v29, 6.0  ;;  %v272_v29 = vld [vmem:[#allocation2 + $0x7b8] sm:$0xff] }
  0xd4   :  { %1549 = vst [vmem:[#allocation5 + $0x648] sm:$0xff] %v1108_v38  ;;  %v692_v38 = vmax.f32 %v251_v30, 0.0  ;;  %v1131_v43 = vmin.f32 %v690_v32, 6.0  ;;  %v273_v32 = vld [vmem:[#allocation2 + $0x7c0] sm:$0xff] }
  0xd5   :  { %1550 = vst [vmem:[#allocation5 + $0x650] sm:$0xff] %v1109_v41  ;;  %v693_v41 = vmax.f32 %v252_v33, 0.0  ;;  %v1132_v46 = vmin.f32 %v691_v35, 6.0  ;;  %v274_v35 = vld [vmem:[#allocation2 + $0x7c8] sm:$0xff] }
  0xd6   :  { %1551 = vst [vmem:[#allocation5 + $0x658] sm:$0xff] %v1110_v44  ;;  %v694_v44 = vmax.f32 %v253_v36, 0.0  ;;  %v1133_v49 = vmin.f32 %v692_v38, 6.0  ;;  %v275_v38 = vld [vmem:[#allocation2 + $0x7d0] sm:$0xff] }
  0xd7   :  { %1552 = vst [vmem:[#allocation5 + $0x660] sm:$0xff] %v1111_v47  ;;  %v695_v47 = vmax.f32 %v254_v39, 0.0  ;;  %v1134_v52 = vmin.f32 %v693_v41, 6.0  ;;  %v276_v41 = vld [vmem:[#allocation2 + $0x7d8] sm:$0xff] }
  0xd8   :  { %1553 = vst [vmem:[#allocation5 + $0x668] sm:$0xff] %v1112_v50  ;;  %v696_v50 = vmax.f32 %v255_v42, 0.0  ;;  %v1135_v55 = vmin.f32 %v694_v44, 6.0  ;;  %v277_v44 = vld [vmem:[#allocation2 + $0x7e0] sm:$0xff] }
  0xd9   :  { %1554 = vst [vmem:[#allocation5 + $0x670] sm:$0xff] %v1113_v53  ;;  %v697_v53 = vmax.f32 %v256_v45, 0.0  ;;  %v1136_v58 = vmin.f32 %v695_v47, 6.0  ;;  %v278_v47 = vld [vmem:[#allocation2 + $0x7e8] sm:$0xff] }
  0xda   :  { %1555 = vst [vmem:[#allocation5 + $0x678] sm:$0xff] %v1114_v56  ;;  %v698_v56 = vmax.f32 %v257_v48, 0.0  ;;  %v1137_v61 = vmin.f32 %v696_v50, 6.0  ;;  %v279_v50 = vld [vmem:[#allocation2 + $0x7f0] sm:$0xff] }
  0xdb   :  { %1556 = vst [vmem:[#allocation5 + $0x680] sm:$0xff] %v1115_v59  ;;  %v699_v59 = vmax.f32 %v258_v51, 0.0  ;;  %v1138_v0 = vmin.f32 %v697_v53, 6.0  ;;  %v280_v53 = vld [vmem:[#allocation2 + $0x7f8] sm:$0xff] }
  0xdc   :  { %1557 = vst [vmem:[#allocation5 + $0x688] sm:$0xff] %v1116_v62  ;;  %v700_v62 = vmax.f32 %v259_v54, 0.0  ;;  %v1139_v3 = vmin.f32 %v698_v56, 6.0  ;;  %v281_v56 = vld [vmem:[#allocation2 + $0x800] sm:$0xff] }
  0xdd   :  { %1558 = vst [vmem:[#allocation5 + $0x690] sm:$0xff] %v1117_v1  ;;  %v701_v1 = vmax.f32 %v260_v57, 0.0  ;;  %v1140_v6 = vmin.f32 %v699_v59, 6.0  ;;  %v282_v59 = vld [vmem:[#allocation2 + $0x808] sm:$0xff] }
  0xde   :  { %1559 = vst [vmem:[#allocation5 + $0x698] sm:$0xff] %v1118_v4  ;;  %v702_v4 = vmax.f32 %v261_v60, 0.0  ;;  %v1141_v9 = vmin.f32 %v700_v62, 6.0  ;;  %v283_v62 = vld [vmem:[#allocation2 + $0x810] sm:$0xff] }
  0xdf   :  { %1560 = vst [vmem:[#allocation5 + $0x6a0] sm:$0xff] %v1119_v7  ;;  %v703_v7 = vmax.f32 %v262_v63, 0.0  ;;  %v1142_v12 = vmin.f32 %v701_v1, 6.0  ;;  %v284_v1 = vld [vmem:[#allocation2 + $0x818] sm:$0xff] }
  0xe0   :  { %1561 = vst [vmem:[#allocation5 + $0x6a8] sm:$0xff] %v1120_v10  ;;  %v704_v10 = vmax.f32 %v263_v2, 0.0  ;;  %v1143_v15 = vmin.f32 %v702_v4, 6.0  ;;  %v285_v4 = vld [vmem:[#allocation2 + $0x820] sm:$0xff] }
  0xe1   :  { %1562 = vst [vmem:[#allocation5 + $0x6b0] sm:$0xff] %v1121_v13  ;;  %v705_v13 = vmax.f32 %v264_v5, 0.0  ;;  %v1144_v18 = vmin.f32 %v703_v7, 6.0  ;;  %v286_v7 = vld [vmem:[#allocation2 + $0x828] sm:$0xff] }
  0xe2   :  { %1563 = vst [vmem:[#allocation5 + $0x6b8] sm:$0xff] %v1122_v16  ;;  %v706_v16 = vmax.f32 %v265_v8, 0.0  ;;  %v1145_v21 = vmin.f32 %v704_v10, 6.0  ;;  %v287_v10 = vld [vmem:[#allocation2 + $0x830] sm:$0xff] }
  0xe3   :  { %1564 = vst [vmem:[#allocation5 + $0x6c0] sm:$0xff] %v1123_v19  ;;  %v707_v19 = vmax.f32 %v266_v11, 0.0  ;;  %v1146_v24 = vmin.f32 %v705_v13, 6.0  ;;  %v288_v13 = vld [vmem:[#allocation2 + $0x838] sm:$0xff] }
  0xe4   :  { %1565 = vst [vmem:[#allocation5 + $0x6c8] sm:$0xff] %v1124_v22  ;;  %v708_v22 = vmax.f32 %v267_v14, 0.0  ;;  %v1147_v27 = vmin.f32 %v706_v16, 6.0  ;;  %v289_v16 = vld [vmem:[#allocation2 + $0x840] sm:$0xff] }
  0xe5   :  { %1566 = vst [vmem:[#allocation5 + $0x6d0] sm:$0xff] %v1125_v25  ;;  %v709_v25 = vmax.f32 %v268_v17, 0.0  ;;  %v1148_v30 = vmin.f32 %v707_v19, 6.0  ;;  %v290_v19 = vld [vmem:[#allocation2 + $0x848] sm:$0xff] }
  0xe6   :  { %1567 = vst [vmem:[#allocation5 + $0x6d8] sm:$0xff] %v1126_v28  ;;  %v710_v28 = vmax.f32 %v269_v20, 0.0  ;;  %v1149_v33 = vmin.f32 %v708_v22, 6.0  ;;  %v291_v22 = vld [vmem:[#allocation2 + $0x850] sm:$0xff] }
  0xe7   :  { %1568 = vst [vmem:[#allocation5 + $0x6e0] sm:$0xff] %v1127_v31  ;;  %v711_v31 = vmax.f32 %v270_v23, 0.0  ;;  %v1150_v36 = vmin.f32 %v709_v25, 6.0  ;;  %v292_v25 = vld [vmem:[#allocation2 + $0x858] sm:$0xff] }
  0xe8   :  { %1569 = vst [vmem:[#allocation5 + $0x6e8] sm:$0xff] %v1128_v34  ;;  %v712_v34 = vmax.f32 %v271_v26, 0.0  ;;  %v1151_v39 = vmin.f32 %v710_v28, 6.0  ;;  %v293_v28 = vld [vmem:[#allocation2 + $0x860] sm:$0xff] }
  0xe9   :  { %1570 = vst [vmem:[#allocation5 + $0x6f0] sm:$0xff] %v1129_v37  ;;  %v713_v37 = vmax.f32 %v272_v29, 0.0  ;;  %v1152_v42 = vmin.f32 %v711_v31, 6.0  ;;  %v294_v31 = vld [vmem:[#allocation2 + $0x868] sm:$0xff] }
  0xea   :  { %1571 = vst [vmem:[#allocation5 + $0x6f8] sm:$0xff] %v1130_v40  ;;  %v714_v40 = vmax.f32 %v273_v32, 0.0  ;;  %v1153_v45 = vmin.f32 %v712_v34, 6.0  ;;  %v295_v34 = vld [vmem:[#allocation2 + $0x870] sm:$0xff] }
  0xeb   :  { %1572 = vst [vmem:[#allocation5 + $0x700] sm:$0xff] %v1131_v43  ;;  %v715_v43 = vmax.f32 %v274_v35, 0.0  ;;  %v1154_v48 = vmin.f32 %v713_v37, 6.0  ;;  %v296_v37 = vld [vmem:[#allocation2 + $0x878] sm:$0xff] }
  0xec   :  { %1573 = vst [vmem:[#allocation5 + $0x708] sm:$0xff] %v1132_v46  ;;  %v716_v46 = vmax.f32 %v275_v38, 0.0  ;;  %v1155_v51 = vmin.f32 %v714_v40, 6.0  ;;  %v297_v40 = vld [vmem:[#allocation2 + $0x880] sm:$0xff] }
  0xed   :  { %1574 = vst [vmem:[#allocation5 + $0x710] sm:$0xff] %v1133_v49  ;;  %v717_v49 = vmax.f32 %v276_v41, 0.0  ;;  %v1156_v54 = vmin.f32 %v715_v43, 6.0  ;;  %v298_v43 = vld [vmem:[#allocation2 + $0x888] sm:$0xff] }
  0xee   :  { %1575 = vst [vmem:[#allocation5 + $0x718] sm:$0xff] %v1134_v52  ;;  %v718_v52 = vmax.f32 %v277_v44, 0.0  ;;  %v1157_v57 = vmin.f32 %v716_v46, 6.0  ;;  %v299_v46 = vld [vmem:[#allocation2 + $0x890] sm:$0xff] }
  0xef   :  { %1576 = vst [vmem:[#allocation5 + $0x720] sm:$0xff] %v1135_v55  ;;  %v719_v55 = vmax.f32 %v278_v47, 0.0  ;;  %v1158_v60 = vmin.f32 %v717_v49, 6.0  ;;  %v300_v49 = vld [vmem:[#allocation2 + $0x898] sm:$0xff] }
  0xf0   :  { %1577 = vst [vmem:[#allocation5 + $0x728] sm:$0xff] %v1136_v58  ;;  %v720_v58 = vmax.f32 %v279_v50, 0.0  ;;  %v1159_v63 = vmin.f32 %v718_v52, 6.0  ;;  %v301_v52 = vld [vmem:[#allocation2 + $0x8a0] sm:$0xff] }
  0xf1   :  { %1578 = vst [vmem:[#allocation5 + $0x730] sm:$0xff] %v1137_v61  ;;  %v721_v61 = vmax.f32 %v280_v53, 0.0  ;;  %v1160_v2 = vmin.f32 %v719_v55, 6.0  ;;  %v302_v55 = vld [vmem:[#allocation2 + $0x8a8] sm:$0xff] }
  0xf2   :  { %1579 = vst [vmem:[#allocation5 + $0x738] sm:$0xff] %v1138_v0  ;;  %v722_v0 = vmax.f32 %v281_v56, 0.0  ;;  %v1161_v5 = vmin.f32 %v720_v58, 6.0  ;;  %v303_v58 = vld [vmem:[#allocation2 + $0x8b0] sm:$0xff] }
  0xf3   :  { %1580 = vst [vmem:[#allocation5 + $0x740] sm:$0xff] %v1139_v3  ;;  %v723_v3 = vmax.f32 %v282_v59, 0.0  ;;  %v1162_v8 = vmin.f32 %v721_v61, 6.0  ;;  %v304_v61 = vld [vmem:[#allocation2 + $0x8b8] sm:$0xff] }
  0xf4   :  { %1581 = vst [vmem:[#allocation5 + $0x748] sm:$0xff] %v1140_v6  ;;  %v724_v6 = vmax.f32 %v283_v62, 0.0  ;;  %v1163_v11 = vmin.f32 %v722_v0, 6.0  ;;  %v305_v0 = vld [vmem:[#allocation2 + $0x8c0] sm:$0xff] }
  0xf5   :  { %1582 = vst [vmem:[#allocation5 + $0x750] sm:$0xff] %v1141_v9  ;;  %v725_v9 = vmax.f32 %v284_v1, 0.0  ;;  %v1164_v14 = vmin.f32 %v723_v3, 6.0  ;;  %v306_v3 = vld [vmem:[#allocation2 + $0x8c8] sm:$0xff] }
  0xf6   :  { %1583 = vst [vmem:[#allocation5 + $0x758] sm:$0xff] %v1142_v12  ;;  %v726_v12 = vmax.f32 %v285_v4, 0.0  ;;  %v1165_v17 = vmin.f32 %v724_v6, 6.0  ;;  %v307_v6 = vld [vmem:[#allocation2 + $0x8d0] sm:$0xff] }
  0xf7   :  { %1584 = vst [vmem:[#allocation5 + $0x760] sm:$0xff] %v1143_v15  ;;  %v727_v15 = vmax.f32 %v286_v7, 0.0  ;;  %v1166_v20 = vmin.f32 %v725_v9, 6.0  ;;  %v308_v9 = vld [vmem:[#allocation2 + $0x8d8] sm:$0xff] }
  0xf8   :  { %1585 = vst [vmem:[#allocation5 + $0x768] sm:$0xff] %v1144_v18  ;;  %v728_v18 = vmax.f32 %v287_v10, 0.0  ;;  %v1167_v23 = vmin.f32 %v726_v12, 6.0  ;;  %v309_v12 = vld [vmem:[#allocation2 + $0x8e0] sm:$0xff] }
  0xf9   :  { %1586 = vst [vmem:[#allocation5 + $0x770] sm:$0xff] %v1145_v21  ;;  %v729_v21 = vmax.f32 %v288_v13, 0.0  ;;  %v1168_v26 = vmin.f32 %v727_v15, 6.0  ;;  %v310_v15 = vld [vmem:[#allocation2 + $0x8e8] sm:$0xff] }
  0xfa   :  { %1587 = vst [vmem:[#allocation5 + $0x778] sm:$0xff] %v1146_v24  ;;  %v730_v24 = vmax.f32 %v289_v16, 0.0  ;;  %v1169_v29 = vmin.f32 %v728_v18, 6.0  ;;  %v311_v18 = vld [vmem:[#allocation2 + $0x8f0] sm:$0xff] }
  0xfb   :  { %1588 = vst [vmem:[#allocation5 + $0x780] sm:$0xff] %v1147_v27  ;;  %v731_v27 = vmax.f32 %v290_v19, 0.0  ;;  %v1170_v32 = vmin.f32 %v729_v21, 6.0  ;;  %v312_v21 = vld [vmem:[#allocation2 + $0x8f8] sm:$0xff] }
  0xfc   :  { %1589 = vst [vmem:[#allocation5 + $0x788] sm:$0xff] %v1148_v30  ;;  %v732_v30 = vmax.f32 %v291_v22, 0.0  ;;  %v1171_v35 = vmin.f32 %v730_v24, 6.0  ;;  %v313_v24 = vld [vmem:[#allocation2 + $0x900] sm:$0xff] }
  0xfd   :  { %1590 = vst [vmem:[#allocation5 + $0x790] sm:$0xff] %v1149_v33  ;;  %v733_v33 = vmax.f32 %v292_v25, 0.0  ;;  %v1172_v38 = vmin.f32 %v731_v27, 6.0  ;;  %v314_v27 = vld [vmem:[#allocation2 + $0x908] sm:$0xff] }
  0xfe   :  { %1591 = vst [vmem:[#allocation5 + $0x798] sm:$0xff] %v1150_v36  ;;  %v734_v36 = vmax.f32 %v293_v28, 0.0  ;;  %v1173_v41 = vmin.f32 %v732_v30, 6.0  ;;  %v315_v30 = vld [vmem:[#allocation2 + $0x910] sm:$0xff] }
  0xff   :  { %1592 = vst [vmem:[#allocation5 + $0x7a0] sm:$0xff] %v1151_v39  ;;  %v735_v39 = vmax.f32 %v294_v31, 0.0  ;;  %v1174_v44 = vmin.f32 %v733_v33, 6.0  ;;  %v316_v33 = vld [vmem:[#allocation2 + $0x918] sm:$0xff] }
 0x100   :  { %1593 = vst [vmem:[#allocation5 + $0x7a8] sm:$0xff] %v1152_v42  ;;  %v736_v42 = vmax.f32 %v295_v34, 0.0  ;;  %v1175_v47 = vmin.f32 %v734_v36, 6.0  ;;  %v317_v36 = vld [vmem:[#allocation2 + $0x920] sm:$0xff] }
 0x101   :  { %1594 = vst [vmem:[#allocation5 + $0x7b0] sm:$0xff] %v1153_v45  ;;  %v737_v45 = vmax.f32 %v296_v37, 0.0  ;;  %v1176_v50 = vmin.f32 %v735_v39, 6.0  ;;  %v318_v39 = vld [vmem:[#allocation2 + $0x928] sm:$0xff] }
 0x102   :  { %1595 = vst [vmem:[#allocation5 + $0x7b8] sm:$0xff] %v1154_v48  ;;  %v738_v48 = vmax.f32 %v297_v40, 0.0  ;;  %v1177_v53 = vmin.f32 %v736_v42, 6.0  ;;  %v319_v42 = vld [vmem:[#allocation2 + $0x930] sm:$0xff] }
 0x103   :  { %1596 = vst [vmem:[#allocation5 + $0x7c0] sm:$0xff] %v1155_v51  ;;  %v739_v51 = vmax.f32 %v298_v43, 0.0  ;;  %v1178_v56 = vmin.f32 %v737_v45, 6.0  ;;  %v320_v45 = vld [vmem:[#allocation2 + $0x938] sm:$0xff] }
 0x104   :  { %1597 = vst [vmem:[#allocation5 + $0x7c8] sm:$0xff] %v1156_v54  ;;  %v740_v54 = vmax.f32 %v299_v46, 0.0  ;;  %v1179_v59 = vmin.f32 %v738_v48, 6.0  ;;  %v321_v48 = vld [vmem:[#allocation2 + $0x940] sm:$0xff] }
 0x105   :  { %1598 = vst [vmem:[#allocation5 + $0x7d0] sm:$0xff] %v1157_v57  ;;  %v741_v57 = vmax.f32 %v300_v49, 0.0  ;;  %v1180_v62 = vmin.f32 %v739_v51, 6.0  ;;  %v322_v51 = vld [vmem:[#allocation2 + $0x948] sm:$0xff] }
 0x106   :  { %1599 = vst [vmem:[#allocation5 + $0x7d8] sm:$0xff] %v1158_v60  ;;  %v742_v60 = vmax.f32 %v301_v52, 0.0  ;;  %v1181_v1 = vmin.f32 %v740_v54, 6.0  ;;  %v323_v54 = vld [vmem:[#allocation2 + $0x950] sm:$0xff] }
 0x107   :  { %1600 = vst [vmem:[#allocation5 + $0x7e0] sm:$0xff] %v1159_v63  ;;  %v743_v63 = vmax.f32 %v302_v55, 0.0  ;;  %v1182_v4 = vmin.f32 %v741_v57, 6.0  ;;  %v324_v57 = vld [vmem:[#allocation2 + $0x958] sm:$0xff] }
 0x108   :  { %1601 = vst [vmem:[#allocation5 + $0x7e8] sm:$0xff] %v1160_v2  ;;  %v744_v2 = vmax.f32 %v303_v58, 0.0  ;;  %v1183_v7 = vmin.f32 %v742_v60, 6.0  ;;  %v325_v60 = vld [vmem:[#allocation2 + $0x960] sm:$0xff] }
 0x109   :  { %1602 = vst [vmem:[#allocation5 + $0x7f0] sm:$0xff] %v1161_v5  ;;  %v745_v5 = vmax.f32 %v304_v61, 0.0  ;;  %v1184_v10 = vmin.f32 %v743_v63, 6.0  ;;  %v326_v63 = vld [vmem:[#allocation2 + $0x968] sm:$0xff] }
 0x10a   :  { %1603 = vst [vmem:[#allocation5 + $0x7f8] sm:$0xff] %v1162_v8  ;;  %v746_v8 = vmax.f32 %v305_v0, 0.0  ;;  %v1185_v13 = vmin.f32 %v744_v2, 6.0  ;;  %v327_v2 = vld [vmem:[#allocation2 + $0x970] sm:$0xff] }
 0x10b   :  { %1604 = vst [vmem:[#allocation5 + $0x800] sm:$0xff] %v1163_v11  ;;  %v747_v11 = vmax.f32 %v306_v3, 0.0  ;;  %v1186_v16 = vmin.f32 %v745_v5, 6.0  ;;  %v328_v5 = vld [vmem:[#allocation2 + $0x978] sm:$0xff] }
 0x10c   :  { %1605 = vst [vmem:[#allocation5 + $0x808] sm:$0xff] %v1164_v14  ;;  %v748_v14 = vmax.f32 %v307_v6, 0.0  ;;  %v1187_v19 = vmin.f32 %v746_v8, 6.0  ;;  %v329_v8 = vld [vmem:[#allocation2 + $0x980] sm:$0xff] }
 0x10d   :  { %1606 = vst [vmem:[#allocation5 + $0x810] sm:$0xff] %v1165_v17  ;;  %v749_v17 = vmax.f32 %v308_v9, 0.0  ;;  %v1188_v22 = vmin.f32 %v747_v11, 6.0  ;;  %v330_v11 = vld [vmem:[#allocation2 + $0x988] sm:$0xff] }
 0x10e   :  { %1607 = vst [vmem:[#allocation5 + $0x818] sm:$0xff] %v1166_v20  ;;  %v750_v20 = vmax.f32 %v309_v12, 0.0  ;;  %v1189_v25 = vmin.f32 %v748_v14, 6.0  ;;  %v331_v14 = vld [vmem:[#allocation2 + $0x990] sm:$0xff] }
 0x10f   :  { %1608 = vst [vmem:[#allocation5 + $0x820] sm:$0xff] %v1167_v23  ;;  %v751_v23 = vmax.f32 %v310_v15, 0.0  ;;  %v1190_v28 = vmin.f32 %v749_v17, 6.0  ;;  %v332_v17 = vld [vmem:[#allocation2 + $0x998] sm:$0xff] }
 0x110   :  { %1609 = vst [vmem:[#allocation5 + $0x828] sm:$0xff] %v1168_v26  ;;  %v752_v26 = vmax.f32 %v311_v18, 0.0  ;;  %v1191_v31 = vmin.f32 %v750_v20, 6.0  ;;  %v333_v20 = vld [vmem:[#allocation2 + $0x9a0] sm:$0xff] }
 0x111   :  { %1610 = vst [vmem:[#allocation5 + $0x830] sm:$0xff] %v1169_v29  ;;  %v753_v29 = vmax.f32 %v312_v21, 0.0  ;;  %v1192_v34 = vmin.f32 %v751_v23, 6.0  ;;  %v334_v23 = vld [vmem:[#allocation2 + $0x9a8] sm:$0xff] }
 0x112   :  { %1611 = vst [vmem:[#allocation5 + $0x838] sm:$0xff] %v1170_v32  ;;  %v754_v32 = vmax.f32 %v313_v24, 0.0  ;;  %v1193_v37 = vmin.f32 %v752_v26, 6.0  ;;  %v335_v26 = vld [vmem:[#allocation2 + $0x9b0] sm:$0xff] }
 0x113   :  { %1612 = vst [vmem:[#allocation5 + $0x840] sm:$0xff] %v1171_v35  ;;  %v755_v35 = vmax.f32 %v314_v27, 0.0  ;;  %v1194_v40 = vmin.f32 %v753_v29, 6.0  ;;  %v336_v29 = vld [vmem:[#allocation2 + $0x9b8] sm:$0xff] }
 0x114   :  { %1613 = vst [vmem:[#allocation5 + $0x848] sm:$0xff] %v1172_v38  ;;  %v756_v38 = vmax.f32 %v315_v30, 0.0  ;;  %v1195_v43 = vmin.f32 %v754_v32, 6.0  ;;  %v337_v32 = vld [vmem:[#allocation2 + $0x9c0] sm:$0xff] }
 0x115   :  { %1614 = vst [vmem:[#allocation5 + $0x850] sm:$0xff] %v1173_v41  ;;  %v757_v41 = vmax.f32 %v316_v33, 0.0  ;;  %v1196_v46 = vmin.f32 %v755_v35, 6.0  ;;  %v338_v35 = vld [vmem:[#allocation2 + $0x9c8] sm:$0xff] }
 0x116   :  { %1615 = vst [vmem:[#allocation5 + $0x858] sm:$0xff] %v1174_v44  ;;  %v758_v44 = vmax.f32 %v317_v36, 0.0  ;;  %v1197_v49 = vmin.f32 %v756_v38, 6.0  ;;  %v339_v38 = vld [vmem:[#allocation2 + $0x9d0] sm:$0xff] }
 0x117   :  { %1616 = vst [vmem:[#allocation5 + $0x860] sm:$0xff] %v1175_v47  ;;  %v759_v47 = vmax.f32 %v318_v39, 0.0  ;;  %v1198_v52 = vmin.f32 %v757_v41, 6.0  ;;  %v340_v41 = vld [vmem:[#allocation2 + $0x9d8] sm:$0xff] }
 0x118   :  { %1617 = vst [vmem:[#allocation5 + $0x868] sm:$0xff] %v1176_v50  ;;  %v760_v50 = vmax.f32 %v319_v42, 0.0  ;;  %v1199_v55 = vmin.f32 %v758_v44, 6.0  ;;  %v341_v44 = vld [vmem:[#allocation2 + $0x9e0] sm:$0xff] }
 0x119   :  { %1618 = vst [vmem:[#allocation5 + $0x870] sm:$0xff] %v1177_v53  ;;  %v761_v53 = vmax.f32 %v320_v45, 0.0  ;;  %v1200_v58 = vmin.f32 %v759_v47, 6.0  ;;  %v342_v47 = vld [vmem:[#allocation2 + $0x9e8] sm:$0xff] }
 0x11a   :  { %1619 = vst [vmem:[#allocation5 + $0x878] sm:$0xff] %v1178_v56  ;;  %v762_v56 = vmax.f32 %v321_v48, 0.0  ;;  %v1201_v61 = vmin.f32 %v760_v50, 6.0  ;;  %v343_v50 = vld [vmem:[#allocation2 + $0x9f0] sm:$0xff] }
 0x11b   :  { %1620 = vst [vmem:[#allocation5 + $0x880] sm:$0xff] %v1179_v59  ;;  %v763_v59 = vmax.f32 %v322_v51, 0.0  ;;  %v1202_v0 = vmin.f32 %v761_v53, 6.0  ;;  %v344_v53 = vld [vmem:[#allocation2 + $0x9f8] sm:$0xff] }
 0x11c   :  { %1621 = vst [vmem:[#allocation5 + $0x888] sm:$0xff] %v1180_v62  ;;  %v764_v62 = vmax.f32 %v323_v54, 0.0  ;;  %v1203_v3 = vmin.f32 %v762_v56, 6.0  ;;  %v345_v56 = vld [vmem:[#allocation2 + $0xa00] sm:$0xff] }
 0x11d   :  { %1622 = vst [vmem:[#allocation5 + $0x890] sm:$0xff] %v1181_v1  ;;  %v765_v1 = vmax.f32 %v324_v57, 0.0  ;;  %v1204_v6 = vmin.f32 %v763_v59, 6.0  ;;  %v346_v59 = vld [vmem:[#allocation2 + $0xa08] sm:$0xff] }
 0x11e   :  { %1623 = vst [vmem:[#allocation5 + $0x898] sm:$0xff] %v1182_v4  ;;  %v766_v4 = vmax.f32 %v325_v60, 0.0  ;;  %v1205_v9 = vmin.f32 %v764_v62, 6.0  ;;  %v347_v62 = vld [vmem:[#allocation2 + $0xa10] sm:$0xff] }
 0x11f   :  { %1624 = vst [vmem:[#allocation5 + $0x8a0] sm:$0xff] %v1183_v7  ;;  %v767_v7 = vmax.f32 %v326_v63, 0.0  ;;  %v1206_v12 = vmin.f32 %v765_v1, 6.0  ;;  %v348_v1 = vld [vmem:[#allocation2 + $0xa18] sm:$0xff] }
 0x120   :  { %1625 = vst [vmem:[#allocation5 + $0x8a8] sm:$0xff] %v1184_v10  ;;  %v768_v10 = vmax.f32 %v327_v2, 0.0  ;;  %v1207_v15 = vmin.f32 %v766_v4, 6.0  ;;  %v349_v4 = vld [vmem:[#allocation2 + $0xa20] sm:$0xff] }
 0x121   :  { %1626 = vst [vmem:[#allocation5 + $0x8b0] sm:$0xff] %v1185_v13  ;;  %v769_v13 = vmax.f32 %v328_v5, 0.0  ;;  %v1208_v18 = vmin.f32 %v767_v7, 6.0  ;;  %v350_v7 = vld [vmem:[#allocation2 + $0xa28] sm:$0xff] }
 0x122   :  { %1627 = vst [vmem:[#allocation5 + $0x8b8] sm:$0xff] %v1186_v16  ;;  %v770_v16 = vmax.f32 %v329_v8, 0.0  ;;  %v1209_v21 = vmin.f32 %v768_v10, 6.0  ;;  %v351_v10 = vld [vmem:[#allocation2 + $0xa30] sm:$0xff] }
 0x123   :  { %1628 = vst [vmem:[#allocation5 + $0x8c0] sm:$0xff] %v1187_v19  ;;  %v771_v19 = vmax.f32 %v330_v11, 0.0  ;;  %v1210_v24 = vmin.f32 %v769_v13, 6.0  ;;  %v352_v13 = vld [vmem:[#allocation2 + $0xa38] sm:$0xff] }
 0x124   :  { %1629 = vst [vmem:[#allocation5 + $0x8c8] sm:$0xff] %v1188_v22  ;;  %v772_v22 = vmax.f32 %v331_v14, 0.0  ;;  %v1211_v27 = vmin.f32 %v770_v16, 6.0  ;;  %v353_v16 = vld [vmem:[#allocation2 + $0xa40] sm:$0xff] }
 0x125   :  { %1630 = vst [vmem:[#allocation5 + $0x8d0] sm:$0xff] %v1189_v25  ;;  %v773_v25 = vmax.f32 %v332_v17, 0.0  ;;  %v1212_v30 = vmin.f32 %v771_v19, 6.0  ;;  %v354_v19 = vld [vmem:[#allocation2 + $0xa48] sm:$0xff] }
 0x126   :  { %1631 = vst [vmem:[#allocation5 + $0x8d8] sm:$0xff] %v1190_v28  ;;  %v774_v28 = vmax.f32 %v333_v20, 0.0  ;;  %v1213_v33 = vmin.f32 %v772_v22, 6.0  ;;  %v355_v22 = vld [vmem:[#allocation2 + $0xa50] sm:$0xff] }
 0x127   :  { %1632 = vst [vmem:[#allocation5 + $0x8e0] sm:$0xff] %v1191_v31  ;;  %v775_v31 = vmax.f32 %v334_v23, 0.0  ;;  %v1214_v36 = vmin.f32 %v773_v25, 6.0  ;;  %v356_v25 = vld [vmem:[#allocation2 + $0xa58] sm:$0xff] }
 0x128   :  { %1633 = vst [vmem:[#allocation5 + $0x8e8] sm:$0xff] %v1192_v34  ;;  %v776_v34 = vmax.f32 %v335_v26, 0.0  ;;  %v1215_v39 = vmin.f32 %v774_v28, 6.0  ;;  %v357_v28 = vld [vmem:[#allocation2 + $0xa60] sm:$0xff] }
 0x129   :  { %1634 = vst [vmem:[#allocation5 + $0x8f0] sm:$0xff] %v1193_v37  ;;  %v777_v37 = vmax.f32 %v336_v29, 0.0  ;;  %v1216_v42 = vmin.f32 %v775_v31, 6.0  ;;  %v358_v31 = vld [vmem:[#allocation2 + $0xa68] sm:$0xff] }
 0x12a   :  { %1635 = vst [vmem:[#allocation5 + $0x8f8] sm:$0xff] %v1194_v40  ;;  %v778_v40 = vmax.f32 %v337_v32, 0.0  ;;  %v1217_v45 = vmin.f32 %v776_v34, 6.0  ;;  %v359_v34 = vld [vmem:[#allocation2 + $0xa70] sm:$0xff] }
 0x12b   :  { %1636 = vst [vmem:[#allocation5 + $0x900] sm:$0xff] %v1195_v43  ;;  %v779_v43 = vmax.f32 %v338_v35, 0.0  ;;  %v1218_v48 = vmin.f32 %v777_v37, 6.0  ;;  %v360_v37 = vld [vmem:[#allocation2 + $0xa78] sm:$0xff] }
 0x12c   :  { %1637 = vst [vmem:[#allocation5 + $0x908] sm:$0xff] %v1196_v46  ;;  %v780_v46 = vmax.f32 %v339_v38, 0.0  ;;  %v1219_v51 = vmin.f32 %v778_v40, 6.0  ;;  %v361_v40 = vld [vmem:[#allocation2 + $0xa80] sm:$0xff] }
 0x12d   :  { %1638 = vst [vmem:[#allocation5 + $0x910] sm:$0xff] %v1197_v49  ;;  %v781_v49 = vmax.f32 %v340_v41, 0.0  ;;  %v1220_v54 = vmin.f32 %v779_v43, 6.0  ;;  %v362_v43 = vld [vmem:[#allocation2 + $0xa88] sm:$0xff] }
 0x12e   :  { %1639 = vst [vmem:[#allocation5 + $0x918] sm:$0xff] %v1198_v52  ;;  %v782_v52 = vmax.f32 %v341_v44, 0.0  ;;  %v1221_v57 = vmin.f32 %v780_v46, 6.0  ;;  %v363_v46 = vld [vmem:[#allocation2 + $0xa90] sm:$0xff] }
 0x12f   :  { %1640 = vst [vmem:[#allocation5 + $0x920] sm:$0xff] %v1199_v55  ;;  %v783_v55 = vmax.f32 %v342_v47, 0.0  ;;  %v1222_v60 = vmin.f32 %v781_v49, 6.0  ;;  %v364_v49 = vld [vmem:[#allocation2 + $0xa98] sm:$0xff] }
 0x130   :  { %1641 = vst [vmem:[#allocation5 + $0x928] sm:$0xff] %v1200_v58  ;;  %v784_v58 = vmax.f32 %v343_v50, 0.0  ;;  %v1223_v63 = vmin.f32 %v782_v52, 6.0  ;;  %v365_v52 = vld [vmem:[#allocation2 + $0xaa0] sm:$0xff] }
 0x131   :  { %1642 = vst [vmem:[#allocation5 + $0x930] sm:$0xff] %v1201_v61  ;;  %v785_v61 = vmax.f32 %v344_v53, 0.0  ;;  %v1224_v2 = vmin.f32 %v783_v55, 6.0  ;;  %v366_v55 = vld [vmem:[#allocation2 + $0xaa8] sm:$0xff] }
 0x132   :  { %1643 = vst [vmem:[#allocation5 + $0x938] sm:$0xff] %v1202_v0  ;;  %v786_v0 = vmax.f32 %v345_v56, 0.0  ;;  %v1225_v5 = vmin.f32 %v784_v58, 6.0  ;;  %v367_v58 = vld [vmem:[#allocation2 + $0xab0] sm:$0xff] }
 0x133   :  { %1644 = vst [vmem:[#allocation5 + $0x940] sm:$0xff] %v1203_v3  ;;  %v787_v3 = vmax.f32 %v346_v59, 0.0  ;;  %v1226_v8 = vmin.f32 %v785_v61, 6.0  ;;  %v368_v61 = vld [vmem:[#allocation2 + $0xab8] sm:$0xff] }
 0x134   :  { %1645 = vst [vmem:[#allocation5 + $0x948] sm:$0xff] %v1204_v6  ;;  %v788_v6 = vmax.f32 %v347_v62, 0.0  ;;  %v1227_v11 = vmin.f32 %v786_v0, 6.0  ;;  %v369_v0 = vld [vmem:[#allocation2 + $0xac0] sm:$0xff] }
 0x135   :  { %1646 = vst [vmem:[#allocation5 + $0x950] sm:$0xff] %v1205_v9  ;;  %v789_v9 = vmax.f32 %v348_v1, 0.0  ;;  %v1228_v14 = vmin.f32 %v787_v3, 6.0  ;;  %v370_v3 = vld [vmem:[#allocation2 + $0xac8] sm:$0xff] }
 0x136   :  { %1647 = vst [vmem:[#allocation5 + $0x958] sm:$0xff] %v1206_v12  ;;  %v790_v12 = vmax.f32 %v349_v4, 0.0  ;;  %v1229_v17 = vmin.f32 %v788_v6, 6.0  ;;  %v371_v6 = vld [vmem:[#allocation2 + $0xad0] sm:$0xff] }
 0x137   :  { %1648 = vst [vmem:[#allocation5 + $0x960] sm:$0xff] %v1207_v15  ;;  %v791_v15 = vmax.f32 %v350_v7, 0.0  ;;  %v1230_v20 = vmin.f32 %v789_v9, 6.0  ;;  %v372_v9 = vld [vmem:[#allocation2 + $0xad8] sm:$0xff] }
 0x138   :  { %1649 = vst [vmem:[#allocation5 + $0x968] sm:$0xff] %v1208_v18  ;;  %v792_v18 = vmax.f32 %v351_v10, 0.0  ;;  %v1231_v23 = vmin.f32 %v790_v12, 6.0  ;;  %v373_v12 = vld [vmem:[#allocation2 + $0xae0] sm:$0xff] }
 0x139   :  { %1650 = vst [vmem:[#allocation5 + $0x970] sm:$0xff] %v1209_v21  ;;  %v793_v21 = vmax.f32 %v352_v13, 0.0  ;;  %v1232_v26 = vmin.f32 %v791_v15, 6.0  ;;  %v374_v15 = vld [vmem:[#allocation2 + $0xae8] sm:$0xff] }
 0x13a   :  { %1651 = vst [vmem:[#allocation5 + $0x978] sm:$0xff] %v1210_v24  ;;  %v794_v24 = vmax.f32 %v353_v16, 0.0  ;;  %v1233_v29 = vmin.f32 %v792_v18, 6.0  ;;  %v375_v18 = vld [vmem:[#allocation2 + $0xaf0] sm:$0xff] }
 0x13b   :  { %1652 = vst [vmem:[#allocation5 + $0x980] sm:$0xff] %v1211_v27  ;;  %v795_v27 = vmax.f32 %v354_v19, 0.0  ;;  %v1234_v32 = vmin.f32 %v793_v21, 6.0  ;;  %v376_v21 = vld [vmem:[#allocation2 + $0xaf8] sm:$0xff] }
 0x13c   :  { %1653 = vst [vmem:[#allocation5 + $0x988] sm:$0xff] %v1212_v30  ;;  %v796_v30 = vmax.f32 %v355_v22, 0.0  ;;  %v1235_v35 = vmin.f32 %v794_v24, 6.0  ;;  %v377_v24 = vld [vmem:[#allocation2 + $0xb00] sm:$0xff] }
 0x13d   :  { %1654 = vst [vmem:[#allocation5 + $0x990] sm:$0xff] %v1213_v33  ;;  %v797_v33 = vmax.f32 %v356_v25, 0.0  ;;  %v1236_v38 = vmin.f32 %v795_v27, 6.0  ;;  %v378_v27 = vld [vmem:[#allocation2 + $0xb08] sm:$0xff] }
 0x13e   :  { %1655 = vst [vmem:[#allocation5 + $0x998] sm:$0xff] %v1214_v36  ;;  %v798_v36 = vmax.f32 %v357_v28, 0.0  ;;  %v1237_v41 = vmin.f32 %v796_v30, 6.0  ;;  %v379_v30 = vld [vmem:[#allocation2 + $0xb10] sm:$0xff] }
 0x13f   :  { %1656 = vst [vmem:[#allocation5 + $0x9a0] sm:$0xff] %v1215_v39  ;;  %v799_v39 = vmax.f32 %v358_v31, 0.0  ;;  %v1238_v44 = vmin.f32 %v797_v33, 6.0  ;;  %v380_v33 = vld [vmem:[#allocation2 + $0xb18] sm:$0xff] }
 0x140   :  { %1657 = vst [vmem:[#allocation5 + $0x9a8] sm:$0xff] %v1216_v42  ;;  %v800_v42 = vmax.f32 %v359_v34, 0.0  ;;  %v1239_v47 = vmin.f32 %v798_v36, 6.0  ;;  %v381_v36 = vld [vmem:[#allocation2 + $0xb20] sm:$0xff] }
 0x141   :  { %1658 = vst [vmem:[#allocation5 + $0x9b0] sm:$0xff] %v1217_v45  ;;  %v801_v45 = vmax.f32 %v360_v37, 0.0  ;;  %v1240_v50 = vmin.f32 %v799_v39, 6.0  ;;  %v382_v39 = vld [vmem:[#allocation2 + $0xb28] sm:$0xff] }
 0x142   :  { %1659 = vst [vmem:[#allocation5 + $0x9b8] sm:$0xff] %v1218_v48  ;;  %v802_v48 = vmax.f32 %v361_v40, 0.0  ;;  %v1241_v53 = vmin.f32 %v800_v42, 6.0  ;;  %v383_v42 = vld [vmem:[#allocation2 + $0xb30] sm:$0xff] }
 0x143   :  { %1660 = vst [vmem:[#allocation5 + $0x9c0] sm:$0xff] %v1219_v51  ;;  %v803_v51 = vmax.f32 %v362_v43, 0.0  ;;  %v1242_v56 = vmin.f32 %v801_v45, 6.0  ;;  %v384_v45 = vld [vmem:[#allocation2 + $0xb38] sm:$0xff] }
 0x144   :  { %1661 = vst [vmem:[#allocation5 + $0x9c8] sm:$0xff] %v1220_v54  ;;  %v804_v54 = vmax.f32 %v363_v46, 0.0  ;;  %v1243_v59 = vmin.f32 %v802_v48, 6.0  ;;  %v385_v48 = vld [vmem:[#allocation2 + $0xb40] sm:$0xff] }
 0x145   :  { %1662 = vst [vmem:[#allocation5 + $0x9d0] sm:$0xff] %v1221_v57  ;;  %v805_v57 = vmax.f32 %v364_v49, 0.0  ;;  %v1244_v62 = vmin.f32 %v803_v51, 6.0  ;;  %v386_v51 = vld [vmem:[#allocation2 + $0xb48] sm:$0xff] }
 0x146   :  { %1663 = vst [vmem:[#allocation5 + $0x9d8] sm:$0xff] %v1222_v60  ;;  %v806_v60 = vmax.f32 %v365_v52, 0.0  ;;  %v1245_v1 = vmin.f32 %v804_v54, 6.0  ;;  %v387_v54 = vld [vmem:[#allocation2 + $0xb50] sm:$0xff] }
 0x147   :  { %1664 = vst [vmem:[#allocation5 + $0x9e0] sm:$0xff] %v1223_v63  ;;  %v807_v63 = vmax.f32 %v366_v55, 0.0  ;;  %v1246_v4 = vmin.f32 %v805_v57, 6.0  ;;  %v388_v57 = vld [vmem:[#allocation2 + $0xb58] sm:$0xff] }
 0x148   :  { %1665 = vst [vmem:[#allocation5 + $0x9e8] sm:$0xff] %v1224_v2  ;;  %v808_v2 = vmax.f32 %v367_v58, 0.0  ;;  %v1247_v7 = vmin.f32 %v806_v60, 6.0  ;;  %v389_v60 = vld [vmem:[#allocation2 + $0xb60] sm:$0xff] }
 0x149   :  { %1666 = vst [vmem:[#allocation5 + $0x9f0] sm:$0xff] %v1225_v5  ;;  %v809_v5 = vmax.f32 %v368_v61, 0.0  ;;  %v1248_v10 = vmin.f32 %v807_v63, 6.0  ;;  %v390_v63 = vld [vmem:[#allocation2 + $0xb68] sm:$0xff] }
 0x14a   :  { %1667 = vst [vmem:[#allocation5 + $0x9f8] sm:$0xff] %v1226_v8  ;;  %v810_v8 = vmax.f32 %v369_v0, 0.0  ;;  %v1249_v13 = vmin.f32 %v808_v2, 6.0  ;;  %v391_v2 = vld [vmem:[#allocation2 + $0xb70] sm:$0xff] }
 0x14b   :  { %1668 = vst [vmem:[#allocation5 + $0xa00] sm:$0xff] %v1227_v11  ;;  %v811_v11 = vmax.f32 %v370_v3, 0.0  ;;  %v1250_v16 = vmin.f32 %v809_v5, 6.0  ;;  %v392_v5 = vld [vmem:[#allocation2 + $0xb78] sm:$0xff] }
 0x14c   :  { %1669 = vst [vmem:[#allocation5 + $0xa08] sm:$0xff] %v1228_v14  ;;  %v812_v14 = vmax.f32 %v371_v6, 0.0  ;;  %v1251_v19 = vmin.f32 %v810_v8, 6.0  ;;  %v393_v8 = vld [vmem:[#allocation2 + $0xb80] sm:$0xff] }
 0x14d   :  { %1670 = vst [vmem:[#allocation5 + $0xa10] sm:$0xff] %v1229_v17  ;;  %v813_v17 = vmax.f32 %v372_v9, 0.0  ;;  %v1252_v22 = vmin.f32 %v811_v11, 6.0  ;;  %v394_v11 = vld [vmem:[#allocation2 + $0xb88] sm:$0xff] }
 0x14e   :  { %1671 = vst [vmem:[#allocation5 + $0xa18] sm:$0xff] %v1230_v20  ;;  %v814_v20 = vmax.f32 %v373_v12, 0.0  ;;  %v1253_v25 = vmin.f32 %v812_v14, 6.0  ;;  %v395_v14 = vld [vmem:[#allocation2 + $0xb90] sm:$0xff] }
 0x14f   :  { %1672 = vst [vmem:[#allocation5 + $0xa20] sm:$0xff] %v1231_v23  ;;  %v815_v23 = vmax.f32 %v374_v15, 0.0  ;;  %v1254_v28 = vmin.f32 %v813_v17, 6.0  ;;  %v396_v17 = vld [vmem:[#allocation2 + $0xb98] sm:$0xff] }
 0x150   :  { %1673 = vst [vmem:[#allocation5 + $0xa28] sm:$0xff] %v1232_v26  ;;  %v816_v26 = vmax.f32 %v375_v18, 0.0  ;;  %v1255_v31 = vmin.f32 %v814_v20, 6.0  ;;  %v397_v20 = vld [vmem:[#allocation2 + $0xba0] sm:$0xff] }
 0x151   :  { %1674 = vst [vmem:[#allocation5 + $0xa30] sm:$0xff] %v1233_v29  ;;  %v817_v29 = vmax.f32 %v376_v21, 0.0  ;;  %v1256_v34 = vmin.f32 %v815_v23, 6.0  ;;  %v398_v23 = vld [vmem:[#allocation2 + $0xba8] sm:$0xff] }
 0x152   :  { %1675 = vst [vmem:[#allocation5 + $0xa38] sm:$0xff] %v1234_v32  ;;  %v818_v32 = vmax.f32 %v377_v24, 0.0  ;;  %v1257_v37 = vmin.f32 %v816_v26, 6.0  ;;  %v399_v26 = vld [vmem:[#allocation2 + $0xbb0] sm:$0xff] }
 0x153   :  { %1676 = vst [vmem:[#allocation5 + $0xa40] sm:$0xff] %v1235_v35  ;;  %v819_v35 = vmax.f32 %v378_v27, 0.0  ;;  %v1258_v40 = vmin.f32 %v817_v29, 6.0  ;;  %v400_v29 = vld [vmem:[#allocation2 + $0xbb8] sm:$0xff] }
 0x154   :  { %1677 = vst [vmem:[#allocation5 + $0xa48] sm:$0xff] %v1236_v38  ;;  %v820_v38 = vmax.f32 %v379_v30, 0.0  ;;  %v1259_v43 = vmin.f32 %v818_v32, 6.0  ;;  %v401_v32 = vld [vmem:[#allocation2 + $0xbc0] sm:$0xff] }
 0x155   :  { %1678 = vst [vmem:[#allocation5 + $0xa50] sm:$0xff] %v1237_v41  ;;  %v821_v41 = vmax.f32 %v380_v33, 0.0  ;;  %v1260_v46 = vmin.f32 %v819_v35, 6.0  ;;  %v402_v35 = vld [vmem:[#allocation2 + $0xbc8] sm:$0xff] }
 0x156   :  { %1679 = vst [vmem:[#allocation5 + $0xa58] sm:$0xff] %v1238_v44  ;;  %v822_v44 = vmax.f32 %v381_v36, 0.0  ;;  %v1261_v49 = vmin.f32 %v820_v38, 6.0  ;;  %v403_v38 = vld [vmem:[#allocation2 + $0xbd0] sm:$0xff] }
 0x157   :  { %1680 = vst [vmem:[#allocation5 + $0xa60] sm:$0xff] %v1239_v47  ;;  %v823_v47 = vmax.f32 %v382_v39, 0.0  ;;  %v1262_v52 = vmin.f32 %v821_v41, 6.0  ;;  %v404_v41 = vld [vmem:[#allocation2 + $0xbd8] sm:$0xff] }
 0x158   :  { %1681 = vst [vmem:[#allocation5 + $0xa68] sm:$0xff] %v1240_v50  ;;  %v824_v50 = vmax.f32 %v383_v42, 0.0  ;;  %v1263_v55 = vmin.f32 %v822_v44, 6.0  ;;  %v405_v44 = vld [vmem:[#allocation2 + $0xbe0] sm:$0xff] }
 0x159   :  { %1682 = vst [vmem:[#allocation5 + $0xa70] sm:$0xff] %v1241_v53  ;;  %v825_v53 = vmax.f32 %v384_v45, 0.0  ;;  %v1264_v58 = vmin.f32 %v823_v47, 6.0  ;;  %v406_v47 = vld [vmem:[#allocation2 + $0xbe8] sm:$0xff] }
 0x15a   :  { %1683 = vst [vmem:[#allocation5 + $0xa78] sm:$0xff] %v1242_v56  ;;  %v826_v56 = vmax.f32 %v385_v48, 0.0  ;;  %v1265_v61 = vmin.f32 %v824_v50, 6.0  ;;  %v407_v50 = vld [vmem:[#allocation2 + $0xbf0] sm:$0xff] }
 0x15b   :  { %1684 = vst [vmem:[#allocation5 + $0xa80] sm:$0xff] %v1243_v59  ;;  %v827_v59 = vmax.f32 %v386_v51, 0.0  ;;  %v1266_v0 = vmin.f32 %v825_v53, 6.0  ;;  %v408_v53 = vld [vmem:[#allocation2 + $0xbf8] sm:$0xff] }
 0x15c   :  { %1685 = vst [vmem:[#allocation5 + $0xa88] sm:$0xff] %v1244_v62  ;;  %v828_v62 = vmax.f32 %v387_v54, 0.0  ;;  %v1267_v3 = vmin.f32 %v826_v56, 6.0  ;;  %v409_v56 = vld [vmem:[#allocation2 + $0xc00] sm:$0xff] }
 0x15d   :  { %1686 = vst [vmem:[#allocation5 + $0xa90] sm:$0xff] %v1245_v1  ;;  %v829_v1 = vmax.f32 %v388_v57, 0.0  ;;  %v1268_v6 = vmin.f32 %v827_v59, 6.0  ;;  %v410_v59 = vld [vmem:[#allocation2 + $0xc08] sm:$0xff] }
 0x15e   :  { %1687 = vst [vmem:[#allocation5 + $0xa98] sm:$0xff] %v1246_v4  ;;  %v830_v4 = vmax.f32 %v389_v60, 0.0  ;;  %v1269_v9 = vmin.f32 %v828_v62, 6.0  ;;  %v411_v62 = vld [vmem:[#allocation2 + $0xc10] sm:$0xff] }
 0x15f   :  { %1688 = vst [vmem:[#allocation5 + $0xaa0] sm:$0xff] %v1247_v7  ;;  %v831_v7 = vmax.f32 %v390_v63, 0.0  ;;  %v1270_v12 = vmin.f32 %v829_v1, 6.0  ;;  %v412_v1 = vld [vmem:[#allocation2 + $0xc18] sm:$0xff] }
 0x160   :  { %1689 = vst [vmem:[#allocation5 + $0xaa8] sm:$0xff] %v1248_v10  ;;  %v832_v10 = vmax.f32 %v391_v2, 0.0  ;;  %v1271_v15 = vmin.f32 %v830_v4, 6.0  ;;  %v413_v4 = vld [vmem:[#allocation2 + $0xc20] sm:$0xff] }
 0x161   :  { %1690 = vst [vmem:[#allocation5 + $0xab0] sm:$0xff] %v1249_v13  ;;  %v833_v13 = vmax.f32 %v392_v5, 0.0  ;;  %v1272_v18 = vmin.f32 %v831_v7, 6.0  ;;  %v414_v7 = vld [vmem:[#allocation2 + $0xc28] sm:$0xff] }
 0x162   :  { %1691 = vst [vmem:[#allocation5 + $0xab8] sm:$0xff] %v1250_v16  ;;  %v834_v16 = vmax.f32 %v393_v8, 0.0  ;;  %v1273_v21 = vmin.f32 %v832_v10, 6.0  ;;  %v415_v10 = vld [vmem:[#allocation2 + $0xc30] sm:$0xff] }
 0x163   :  { %1692 = vst [vmem:[#allocation5 + $0xac0] sm:$0xff] %v1251_v19  ;;  %v835_v19 = vmax.f32 %v394_v11, 0.0  ;;  %v1274_v24 = vmin.f32 %v833_v13, 6.0  ;;  %v416_v13 = vld [vmem:[#allocation2 + $0xc38] sm:$0xff] }
 0x164   :  { %1693 = vst [vmem:[#allocation5 + $0xac8] sm:$0xff] %v1252_v22  ;;  %v836_v22 = vmax.f32 %v395_v14, 0.0  ;;  %v1275_v27 = vmin.f32 %v834_v16, 6.0  ;;  %v417_v16 = vld [vmem:[#allocation2 + $0xc40] sm:$0xff] }
 0x165   :  { %1694 = vst [vmem:[#allocation5 + $0xad0] sm:$0xff] %v1253_v25  ;;  %v837_v25 = vmax.f32 %v396_v17, 0.0  ;;  %v1276_v30 = vmin.f32 %v835_v19, 6.0  ;;  %v418_v19 = vld [vmem:[#allocation2 + $0xc48] sm:$0xff] }
 0x166   :  { %1695 = vst [vmem:[#allocation5 + $0xad8] sm:$0xff] %v1254_v28  ;;  %v838_v28 = vmax.f32 %v397_v20, 0.0  ;;  %v1277_v33 = vmin.f32 %v836_v22, 6.0  ;;  %v419_v22 = vld [vmem:[#allocation2 + $0xc50] sm:$0xff] }
 0x167   :  { %1696 = vst [vmem:[#allocation5 + $0xae0] sm:$0xff] %v1255_v31  ;;  %v839_v31 = vmax.f32 %v398_v23, 0.0  ;;  %v1278_v36 = vmin.f32 %v837_v25, 6.0  ;;  %v420_v25 = vld [vmem:[#allocation2 + $0xc58] sm:$0xff] }
 0x168   :  { %1697 = vst [vmem:[#allocation5 + $0xae8] sm:$0xff] %v1256_v34  ;;  %v840_v34 = vmax.f32 %v399_v26, 0.0  ;;  %v1279_v39 = vmin.f32 %v838_v28, 6.0  ;;  %v421_v28 = vld [vmem:[#allocation2 + $0xc60] sm:$0xff] }
 0x169   :  { %1698 = vst [vmem:[#allocation5 + $0xaf0] sm:$0xff] %v1257_v37  ;;  %v841_v37 = vmax.f32 %v400_v29, 0.0  ;;  %v1280_v42 = vmin.f32 %v839_v31, 6.0  ;;  %v422_v31 = vld [vmem:[#allocation2 + $0xc68] sm:$0xff] }
 0x16a   :  { %1699 = vst [vmem:[#allocation5 + $0xaf8] sm:$0xff] %v1258_v40  ;;  %v842_v40 = vmax.f32 %v401_v32, 0.0  ;;  %v1281_v45 = vmin.f32 %v840_v34, 6.0  ;;  %v423_v34 = vld [vmem:[#allocation2 + $0xc70] sm:$0xff] }
 0x16b   :  { %1700 = vst [vmem:[#allocation5 + $0xb00] sm:$0xff] %v1259_v43  ;;  %v843_v43 = vmax.f32 %v402_v35, 0.0  ;;  %v1282_v48 = vmin.f32 %v841_v37, 6.0  ;;  %v424_v37 = vld [vmem:[#allocation2 + $0xc78] sm:$0xff] }
 0x16c   :  { %1701 = vst [vmem:[#allocation5 + $0xb08] sm:$0xff] %v1260_v46  ;;  %v844_v46 = vmax.f32 %v403_v38, 0.0  ;;  %v1283_v51 = vmin.f32 %v842_v40, 6.0  ;;  %v425_v40 = vld [vmem:[#allocation2 + $0xc80] sm:$0xff] }
 0x16d   :  { %1702 = vst [vmem:[#allocation5 + $0xb10] sm:$0xff] %v1261_v49  ;;  %v845_v49 = vmax.f32 %v404_v41, 0.0  ;;  %v1284_v54 = vmin.f32 %v843_v43, 6.0  ;;  %v426_v43 = vld [vmem:[#allocation2 + $0xc88] sm:$0xff] }
 0x16e   :  { %1703 = vst [vmem:[#allocation5 + $0xb18] sm:$0xff] %v1262_v52  ;;  %v846_v52 = vmax.f32 %v405_v44, 0.0  ;;  %v1285_v57 = vmin.f32 %v844_v46, 6.0  ;;  %v427_v46 = vld [vmem:[#allocation2 + $0xc90] sm:$0xff] }
 0x16f   :  { %1704 = vst [vmem:[#allocation5 + $0xb20] sm:$0xff] %v1263_v55  ;;  %v847_v55 = vmax.f32 %v406_v47, 0.0  ;;  %v1286_v60 = vmin.f32 %v845_v49, 6.0  ;;  %v428_v49 = vld [vmem:[#allocation2 + $0xc98] sm:$0xff] }
 0x170   :  { %1705 = vst [vmem:[#allocation5 + $0xb28] sm:$0xff] %v1264_v58  ;;  %v848_v58 = vmax.f32 %v407_v50, 0.0  ;;  %v1287_v63 = vmin.f32 %v846_v52, 6.0  ;;  %v429_v52 = vld [vmem:[#allocation2 + $0xca0] sm:$0xff] }
 0x171   :  { %1706 = vst [vmem:[#allocation5 + $0xb30] sm:$0xff] %v1265_v61  ;;  %v849_v61 = vmax.f32 %v408_v53, 0.0  ;;  %v1288_v2 = vmin.f32 %v847_v55, 6.0  ;;  %v430_v55 = vld [vmem:[#allocation2 + $0xca8] sm:$0xff] }
 0x172   :  { %1707 = vst [vmem:[#allocation5 + $0xb38] sm:$0xff] %v1266_v0  ;;  %v850_v0 = vmax.f32 %v409_v56, 0.0  ;;  %v1289_v5 = vmin.f32 %v848_v58, 6.0  ;;  %v431_v58 = vld [vmem:[#allocation2 + $0xcb0] sm:$0xff] }
 0x173   :  { %1708 = vst [vmem:[#allocation5 + $0xb40] sm:$0xff] %v1267_v3  ;;  %v851_v3 = vmax.f32 %v410_v59, 0.0  ;;  %v1290_v8 = vmin.f32 %v849_v61, 6.0  ;;  %v432_v61 = vld [vmem:[#allocation2 + $0xcb8] sm:$0xff] }
 0x174   :  { %1709 = vst [vmem:[#allocation5 + $0xb48] sm:$0xff] %v1268_v6  ;;  %v852_v6 = vmax.f32 %v411_v62, 0.0  ;;  %v1291_v11 = vmin.f32 %v850_v0, 6.0  ;;  %v433_v0 = vld [vmem:[#allocation2 + $0xcc0] sm:$0xff] }
 0x175   :  { %1710 = vst [vmem:[#allocation5 + $0xb50] sm:$0xff] %v1269_v9  ;;  %v853_v9 = vmax.f32 %v412_v1, 0.0  ;;  %v1292_v14 = vmin.f32 %v851_v3, 6.0  ;;  %v434_v3 = vld [vmem:[#allocation2 + $0xcc8] sm:$0xff] }
 0x176   :  { %1711 = vst [vmem:[#allocation5 + $0xb58] sm:$0xff] %v1270_v12  ;;  %v854_v12 = vmax.f32 %v413_v4, 0.0  ;;  %v1293_v17 = vmin.f32 %v852_v6, 6.0  ;;  %v435_v6 = vld [vmem:[#allocation2 + $0xcd0] sm:$0xff] }
 0x177   :  { %1712 = vst [vmem:[#allocation5 + $0xb60] sm:$0xff] %v1271_v15  ;;  %v855_v15 = vmax.f32 %v414_v7, 0.0  ;;  %v1294_v20 = vmin.f32 %v853_v9, 6.0  ;;  %v436_v9 = vld [vmem:[#allocation2 + $0xcd8] sm:$0xff] }
 0x178   :  { %1713 = vst [vmem:[#allocation5 + $0xb68] sm:$0xff] %v1272_v18  ;;  %v856_v18 = vmax.f32 %v415_v10, 0.0  ;;  %v1295_v23 = vmin.f32 %v854_v12, 6.0  ;;  %v437_v12 = vld [vmem:[#allocation2 + $0xce0] sm:$0xff] }
 0x179   :  { %1714 = vst [vmem:[#allocation5 + $0xb70] sm:$0xff] %v1273_v21  ;;  %v857_v21 = vmax.f32 %v416_v13, 0.0  ;;  %v1296_v26 = vmin.f32 %v855_v15, 6.0  ;;  %v438_v15 = vld [vmem:[#allocation2 + $0xce8] sm:$0xff] }
 0x17a   :  { %1715 = vst [vmem:[#allocation5 + $0xb78] sm:$0xff] %v1274_v24  ;;  %v858_v24 = vmax.f32 %v417_v16, 0.0  ;;  %v1297_v29 = vmin.f32 %v856_v18, 6.0  ;;  %v439_v18 = vld [vmem:[#allocation2 + $0xcf0] sm:$0xff] }
 0x17b   :  { %1716 = vst [vmem:[#allocation5 + $0xb80] sm:$0xff] %v1275_v27  ;;  %v859_v27 = vmax.f32 %v418_v19, 0.0  ;;  %v1298_v32 = vmin.f32 %v857_v21, 6.0  ;;  %v440_v21 = vld [vmem:[#allocation2 + $0xcf8] sm:$0xff] }
 0x17c   :  { %1717 = vst [vmem:[#allocation5 + $0xb88] sm:$0xff] %v1276_v30  ;;  %v860_v30 = vmax.f32 %v419_v22, 0.0  ;;  %v1299_v35 = vmin.f32 %v858_v24, 6.0  ;;  %v441_v24 = vld [vmem:[#allocation2 + $0xd00] sm:$0xff] }
 0x17d   :  { %1718 = vst [vmem:[#allocation5 + $0xb90] sm:$0xff] %v1277_v33  ;;  %v861_v33 = vmax.f32 %v420_v25, 0.0  ;;  %v1300_v38 = vmin.f32 %v859_v27, 6.0  ;;  %v442_v27 = vld [vmem:[#allocation2 + $0xd08] sm:$0xff] }
 0x17e   :  { %1719 = vst [vmem:[#allocation5 + $0xb98] sm:$0xff] %v1278_v36  ;;  %v862_v36 = vmax.f32 %v421_v28, 0.0  ;;  %v1301_v41 = vmin.f32 %v860_v30, 6.0  ;;  %v443_v30 = vld [vmem:[#allocation2 + $0xd10] sm:$0xff] }
 0x17f   :  { %1720 = vst [vmem:[#allocation5 + $0xba0] sm:$0xff] %v1279_v39  ;;  %v863_v39 = vmax.f32 %v422_v31, 0.0  ;;  %v1302_v44 = vmin.f32 %v861_v33, 6.0  ;;  %v444_v33 = vld [vmem:[#allocation2 + $0xd18] sm:$0xff] }
 0x180   :  { %1721 = vst [vmem:[#allocation5 + $0xba8] sm:$0xff] %v1280_v42  ;;  %v864_v42 = vmax.f32 %v423_v34, 0.0  ;;  %v1303_v47 = vmin.f32 %v862_v36, 6.0  ;;  %v445_v36 = vld [vmem:[#allocation2 + $0xd20] sm:$0xff] }
 0x181   :  { %1722 = vst [vmem:[#allocation5 + $0xbb0] sm:$0xff] %v1281_v45  ;;  %v865_v45 = vmax.f32 %v424_v37, 0.0  ;;  %v1304_v50 = vmin.f32 %v863_v39, 6.0  ;;  %v446_v39 = vld [vmem:[#allocation2 + $0xd28] sm:$0xff] }
 0x182   :  { %1723 = vst [vmem:[#allocation5 + $0xbb8] sm:$0xff] %v1282_v48  ;;  %v866_v48 = vmax.f32 %v425_v40, 0.0  ;;  %v1305_v53 = vmin.f32 %v864_v42, 6.0  ;;  %v447_v42 = vld [vmem:[#allocation2 + $0xd30] sm:$0xff] }
 0x183   :  { %1724 = vst [vmem:[#allocation5 + $0xbc0] sm:$0xff] %v1283_v51  ;;  %v867_v51 = vmax.f32 %v426_v43, 0.0  ;;  %v1306_v56 = vmin.f32 %v865_v45, 6.0  ;;  %v448_v45 = vld [vmem:[#allocation2 + $0xd38] sm:$0xff] }
 0x184   :  { %1725 = vst [vmem:[#allocation5 + $0xbc8] sm:$0xff] %v1284_v54  ;;  %v868_v54 = vmax.f32 %v427_v46, 0.0  ;;  %v1307_v59 = vmin.f32 %v866_v48, 6.0  ;;  %v449_v48 = vld [vmem:[#allocation2 + $0xd40] sm:$0xff] }
 0x185   :  { %1726 = vst [vmem:[#allocation5 + $0xbd0] sm:$0xff] %v1285_v57  ;;  %v869_v57 = vmax.f32 %v428_v49, 0.0  ;;  %v1308_v62 = vmin.f32 %v867_v51, 6.0  ;;  %v450_v51 = vld [vmem:[#allocation2 + $0xd48] sm:$0xff] }
 0x186   :  { %1727 = vst [vmem:[#allocation5 + $0xbd8] sm:$0xff] %v1286_v60  ;;  %v870_v60 = vmax.f32 %v429_v52, 0.0  ;;  %v1309_v1 = vmin.f32 %v868_v54, 6.0  ;;  %v451_v54 = vld [vmem:[#allocation2 + $0xd50] sm:$0xff] }
 0x187   :  { %1728 = vst [vmem:[#allocation5 + $0xbe0] sm:$0xff] %v1287_v63  ;;  %v871_v63 = vmax.f32 %v430_v55, 0.0  ;;  %v1310_v4 = vmin.f32 %v869_v57, 6.0  ;;  %v452_v57 = vld [vmem:[#allocation2 + $0xd58] sm:$0xff] }
 0x188   :  { %1729 = vst [vmem:[#allocation5 + $0xbe8] sm:$0xff] %v1288_v2  ;;  %v872_v2 = vmax.f32 %v431_v58, 0.0  ;;  %v1311_v7 = vmin.f32 %v870_v60, 6.0  ;;  %v453_v60 = vld [vmem:[#allocation2 + $0xd60] sm:$0xff] }
 0x189   :  { %1730 = vst [vmem:[#allocation5 + $0xbf0] sm:$0xff] %v1289_v5  ;;  %v873_v5 = vmax.f32 %v432_v61, 0.0  ;;  %v1312_v10 = vmin.f32 %v871_v63, 6.0  ;;  %v454_v63 = vld [vmem:[#allocation2 + $0xd68] sm:$0xff] }
 0x18a   :  { %1731 = vst [vmem:[#allocation5 + $0xbf8] sm:$0xff] %v1290_v8  ;;  %v874_v8 = vmax.f32 %v433_v0, 0.0  ;;  %v1313_v13 = vmin.f32 %v872_v2, 6.0  ;;  %v455_v2 = vld [vmem:[#allocation2 + $0xd70] sm:$0xff] }
 0x18b   :  { %1732 = vst [vmem:[#allocation5 + $0xc00] sm:$0xff] %v1291_v11  ;;  %v875_v11 = vmax.f32 %v434_v3, 0.0  ;;  %v1314_v16 = vmin.f32 %v873_v5, 6.0  ;;  %v456_v5 = vld [vmem:[#allocation2 + $0xd78] sm:$0xff] }
 0x18c   :  { %1733 = vst [vmem:[#allocation5 + $0xc08] sm:$0xff] %v1292_v14  ;;  %v876_v14 = vmax.f32 %v435_v6, 0.0  ;;  %v1315_v19 = vmin.f32 %v874_v8, 6.0  ;;  %v457_v8 = vld [vmem:[#allocation2 + $0xd80] sm:$0xff] }
 0x18d   :  { %1734 = vst [vmem:[#allocation5 + $0xc10] sm:$0xff] %v1293_v17  ;;  %v877_v17 = vmax.f32 %v436_v9, 0.0  ;;  %v1316_v22 = vmin.f32 %v875_v11, 6.0  ;;  %v458_v11 = vld [vmem:[#allocation2 + $0xd88] sm:$0xff] }
 0x18e   :  { %1735 = vst [vmem:[#allocation5 + $0xc18] sm:$0xff] %v1294_v20  ;;  %v878_v20 = vmax.f32 %v437_v12, 0.0  ;;  %v1317_v25 = vmin.f32 %v876_v14, 6.0  ;;  %v459_v14 = vld [vmem:[#allocation2 + $0xd90] sm:$0xff] }
 0x18f   :  { %1736 = vst [vmem:[#allocation5 + $0xc20] sm:$0xff] %v1295_v23  ;;  %v879_v23 = vmax.f32 %v438_v15, 0.0  ;;  %v1318_v28 = vmin.f32 %v877_v17, 6.0  ;;  %v460_v17 = vld [vmem:[#allocation2 + $0xd98] sm:$0xff] }
 0x190   :  { %1737 = vst [vmem:[#allocation5 + $0xc28] sm:$0xff] %v1296_v26  ;;  %v880_v26 = vmax.f32 %v439_v18, 0.0  ;;  %v1319_v31 = vmin.f32 %v878_v20, 6.0  ;;  %v461_v20 = vld [vmem:[#allocation2 + $0xda0] sm:$0xff] }
 0x191   :  { %1738 = vst [vmem:[#allocation5 + $0xc30] sm:$0xff] %v1297_v29  ;;  %v881_v29 = vmax.f32 %v440_v21, 0.0  ;;  %v1320_v34 = vmin.f32 %v879_v23, 6.0  ;;  %v462_v23 = vld [vmem:[#allocation2 + $0xda8] sm:$0xff] }
 0x192   :  { %1739 = vst [vmem:[#allocation5 + $0xc38] sm:$0xff] %v1298_v32  ;;  %v882_v32 = vmax.f32 %v441_v24, 0.0  ;;  %v1321_v37 = vmin.f32 %v880_v26, 6.0  ;;  %v463_v26 = vld [vmem:[#allocation2 + $0xdb0] sm:$0xff] }
 0x193   :  { %1740 = vst [vmem:[#allocation5 + $0xc40] sm:$0xff] %v1299_v35  ;;  %v883_v35 = vmax.f32 %v442_v27, 0.0  ;;  %v1322_v40 = vmin.f32 %v881_v29, 6.0  ;;  %v464_v29 = vld [vmem:[#allocation2 + $0xdb8] sm:$0xff] }
 0x194   :  { %1741 = vst [vmem:[#allocation5 + $0xc48] sm:$0xff] %v1300_v38  ;;  %v884_v38 = vmax.f32 %v443_v30, 0.0  ;;  %v1323_v43 = vmin.f32 %v882_v32, 6.0  ;;  %v465_v32 = vld [vmem:[#allocation2 + $0xdc0] sm:$0xff] }
 0x195   :  { %1742 = vst [vmem:[#allocation5 + $0xc50] sm:$0xff] %v1301_v41  ;;  %v885_v41 = vmax.f32 %v444_v33, 0.0  ;;  %v1324_v46 = vmin.f32 %v883_v35, 6.0 }
 0x196   :  { %1743 = vst [vmem:[#allocation5 + $0xc58] sm:$0xff] %v1302_v44  ;;  %v886_v44 = vmax.f32 %v445_v36, 0.0  ;;  %v1325_v49 = vmin.f32 %v884_v38, 6.0  ;;  %v905_v36 = vmax.f32 %v464_v29, 0.0  ;;  %v906_v38 = vmax.f32 %v465_v32, 0.0 }
 0x197   :  { %1744 = vst [vmem:[#allocation5 + $0xc60] sm:$0xff] %v1303_v47  ;;  %v887_v47 = vmax.f32 %v446_v39, 0.0  ;;  %v1326_v52 = vmin.f32 %v885_v41, 6.0 }
 0x198   :  { %1745 = vst [vmem:[#allocation5 + $0xc68] sm:$0xff] %v1304_v50  ;;  %v888_v50 = vmax.f32 %v447_v42, 0.0  ;;  %v1327_v55 = vmin.f32 %v886_v44, 6.0  ;;  %v1346_v41 = vmin.f32 %v905_v36, 6.0  ;;  %v1347_v42 = vmin.f32 %v906_v38, 6.0 }
 0x199   :  { %1746 = vst [vmem:[#allocation5 + $0xc70] sm:$0xff] %v1305_v53  ;;  %v889_v53 = vmax.f32 %v448_v45, 0.0  ;;  %v1328_v58 = vmin.f32 %v887_v47, 6.0 }
 0x19a   :  { %1747 = vst [vmem:[#allocation5 + $0xc78] sm:$0xff] %v1306_v56  ;;  %v890_v56 = vmax.f32 %v449_v48, 0.0  ;;  %v1329_v61 = vmin.f32 %v888_v50, 6.0 }
 0x19b   :  { %1748 = vst [vmem:[#allocation5 + $0xc80] sm:$0xff] %v1307_v59  ;;  %v891_v59 = vmax.f32 %v450_v51, 0.0  ;;  %v1330_v0 = vmin.f32 %v889_v53, 6.0 }
 0x19c   :  { %1749 = vst [vmem:[#allocation5 + $0xc88] sm:$0xff] %v1308_v62  ;;  %v892_v62 = vmax.f32 %v451_v54, 0.0  ;;  %v1331_v3 = vmin.f32 %v890_v56, 6.0 }
 0x19d   :  { %1750 = vst [vmem:[#allocation5 + $0xc90] sm:$0xff] %v1309_v1  ;;  %v893_v1 = vmax.f32 %v452_v57, 0.0  ;;  %v1332_v6 = vmin.f32 %v891_v59, 6.0 }
 0x19e   :  { %1751 = vst [vmem:[#allocation5 + $0xc98] sm:$0xff] %v1310_v4  ;;  %v894_v4 = vmax.f32 %v453_v60, 0.0  ;;  %v1333_v9 = vmin.f32 %v892_v62, 6.0 }
 0x19f   :  { %1752 = vst [vmem:[#allocation5 + $0xca0] sm:$0xff] %v1311_v7  ;;  %v895_v7 = vmax.f32 %v454_v63, 0.0  ;;  %v1334_v12 = vmin.f32 %v893_v1, 6.0 }
 0x1a0   :  { %1753 = vst [vmem:[#allocation5 + $0xca8] sm:$0xff] %v1312_v10  ;;  %v896_v10 = vmax.f32 %v455_v2, 0.0  ;;  %v1335_v15 = vmin.f32 %v894_v4, 6.0 }
 0x1a1   :  { %1754 = vst [vmem:[#allocation5 + $0xcb0] sm:$0xff] %v1313_v13  ;;  %v897_v13 = vmax.f32 %v456_v5, 0.0  ;;  %v1336_v18 = vmin.f32 %v895_v7, 6.0 }
 0x1a2   :  { %1755 = vst [vmem:[#allocation5 + $0xcb8] sm:$0xff] %v1314_v16  ;;  %v898_v16 = vmax.f32 %v457_v8, 0.0  ;;  %v1337_v21 = vmin.f32 %v896_v10, 6.0 }
 0x1a3   :  { %1756 = vst [vmem:[#allocation5 + $0xcc0] sm:$0xff] %v1315_v19  ;;  %v899_v19 = vmax.f32 %v458_v11, 0.0  ;;  %v1338_v24 = vmin.f32 %v897_v13, 6.0 }
 0x1a4   :  { %1757 = vst [vmem:[#allocation5 + $0xcc8] sm:$0xff] %v1316_v22  ;;  %v900_v22 = vmax.f32 %v459_v14, 0.0  ;;  %v1339_v27 = vmin.f32 %v898_v16, 6.0 }
 0x1a5   :  { %1758 = vst [vmem:[#allocation5 + $0xcd0] sm:$0xff] %v1317_v25  ;;  %v901_v25 = vmax.f32 %v460_v17, 0.0  ;;  %v1340_v30 = vmin.f32 %v899_v19, 6.0 }
 0x1a6   :  { %1759 = vst [vmem:[#allocation5 + $0xcd8] sm:$0xff] %v1318_v28  ;;  %v902_v28 = vmax.f32 %v461_v20, 0.0  ;;  %v1341_v33 = vmin.f32 %v900_v22, 6.0 }
 0x1a7   :  { %1760 = vst [vmem:[#allocation5 + $0xce0] sm:$0xff] %v1319_v31  ;;  %v903_v31 = vmax.f32 %v462_v23, 0.0  ;;  %v1342_v35 = vmin.f32 %v901_v25, 6.0 }
 0x1a8   :  { %1761 = vst [vmem:[#allocation5 + $0xce8] sm:$0xff] %v1320_v34  ;;  %v904_v34 = vmax.f32 %v463_v26, 0.0 }
 0x1a9   :  { %1762 = vst [vmem:[#allocation5 + $0xcf0] sm:$0xff] %v1321_v37  ;;  %v1343_v37 = vmin.f32 %v902_v28, 6.0  ;;  %v1344_v39 = vmin.f32 %v903_v31, 6.0 }
 0x1aa   :  { %1763 = vst [vmem:[#allocation5 + $0xcf8] sm:$0xff] %v1322_v40  ;;  %v1345_v40 = vmin.f32 %v904_v34, 6.0 }
 0x1ab   :  { %1764 = vst [vmem:[#allocation5 + $0xd00] sm:$0xff] %v1323_v43 }
 0x1ac   :  { %1765 = vst [vmem:[#allocation5 + $0xd08] sm:$0xff] %v1324_v46 }
 0x1ad   :  { %1766 = vst [vmem:[#allocation5 + $0xd10] sm:$0xff] %v1325_v49 }
 0x1ae   :  { %1767 = vst [vmem:[#allocation5 + $0xd18] sm:$0xff] %v1326_v52 }
 0x1af   :  { %1768 = vst [vmem:[#allocation5 + $0xd20] sm:$0xff] %v1327_v55 }
 0x1b0   :  { %1769 = vst [vmem:[#allocation5 + $0xd28] sm:$0xff] %v1328_v58 }
 0x1b1   :  { %1770 = vst [vmem:[#allocation5 + $0xd30] sm:$0xff] %v1329_v61 }
 0x1b2   :  { %1771 = vst [vmem:[#allocation5 + $0xd38] sm:$0xff] %v1330_v0 }
 0x1b3   :  { %1772 = vst [vmem:[#allocation5 + $0xd40] sm:$0xff] %v1331_v3 }
 0x1b4   :  { %1773 = vst [vmem:[#allocation5 + $0xd48] sm:$0xff] %v1332_v6 }
 0x1b5   :  { %1774 = vst [vmem:[#allocation5 + $0xd50] sm:$0xff] %v1333_v9 }
 0x1b6   :  { %1775 = vst [vmem:[#allocation5 + $0xd58] sm:$0xff] %v1334_v12 }
 0x1b7   :  { %1776 = vst [vmem:[#allocation5 + $0xd60] sm:$0xff] %v1335_v15 }
 0x1b8   :  { %1777 = vst [vmem:[#allocation5 + $0xd68] sm:$0xff] %v1336_v18 }
 0x1b9   :  { %1778 = vst [vmem:[#allocation5 + $0xd70] sm:$0xff] %v1337_v21 }
 0x1ba   :  { %1779 = vst [vmem:[#allocation5 + $0xd78] sm:$0xff] %v1338_v24 }
 0x1bb   :  { %1780 = vst [vmem:[#allocation5 + $0xd80] sm:$0xff] %v1339_v27 }
 0x1bc   :  { %1781 = vst [vmem:[#allocation5 + $0xd88] sm:$0xff] %v1340_v30 }
 0x1bd   :  { %1782 = vst [vmem:[#allocation5 + $0xd90] sm:$0xff] %v1341_v33 }
 0x1be   :  { %1783 = vst [vmem:[#allocation5 + $0xd98] sm:$0xff] %v1342_v35 }
 0x1bf   :  { %1784 = vst [vmem:[#allocation5 + $0xda0] sm:$0xff] %v1343_v37 }
 0x1c0   :  { %1785 = vst [vmem:[#allocation5 + $0xda8] sm:$0xff] %v1344_v39 }
 0x1c1   :  { %1786 = vst [vmem:[#allocation5 + $0xdb0] sm:$0xff] %v1345_v40 }
 0x1c2   :  { %1787 = vst [vmem:[#allocation5 + $0xdb8] sm:$0xff] %v1346_v41 }
 0x1c3   :  { %1788 = vst [vmem:[#allocation5 + $0xdc0] sm:$0xff] %v1347_v42 }
 0x1c4   :  { %1801 = dma.vmem_to_hbm [thread:$0]  %s1794_s13, 56448, %s1796_s16, [#allocation4], %s1865_s11, %s1865_s11, %s1866_s12  }
 0x1c5   :  { %1862 = dma.done.wait [#allocation4], 56448  }
 0x1c6   :  { %1863 = vsyncadd [#allocation4], 4294910848 }
 0x1c7   :  { %1806 = vsyncpa [#allocation3], 1 }
 0x1c8   :  { %1807 = vsyncpa [#allocation4], 1 }

</bundles_post_ra>
